<compile_context>
chip_gen: v6e
topology: v6e:2x2x1
jax: 0.10.0
libtpu: 0.0.40
codegen_flags: <defaults>
</compile_context>

<pallas_src>
import jax
import jax.numpy as jnp
from jax.experimental import pallas as pl
from jax.experimental.pallas import tpu as pltpu


def _round_up(x, m):
    return ((x + m - 1) // m) * m


# ----------------------------- Pallas kernel ------------------------------ #
def cbow_kernel(idx_ref, m_ref, b1_ref, w2_ref, b2_ref, out_ref):
    # idx_ref : (Bt, 2C)    int32  context word ids for this batch tile
    # m_ref   : (2C*V, H)   bf16   fused embedding@W1 table (VMEM resident)
    # b1_ref  : (1, H)      f32
    # w2_ref  : (H, V)      bf16   linear2 weight, (in, out) layout
    # b2_ref  : (1, V)      f32    (broadcast over the batch tile)
    # out_ref : (Bt, V)     f32    log-probabilities
    idx = idx_ref[...]                               # (Bt, 2C) int32
    bt, n_ctx = idx.shape
    two_c_v, hdim = m_ref.shape
    v = two_c_v // n_ctx

    # Fused gather + Linear1: big bf16 one-hot, one full-width MXU matmul.
    col = jax.lax.broadcasted_iota(jnp.int32, (bt, v), 1)        # (Bt, V)
    pieces = [(idx[:, c:c + 1] == col).astype(jnp.bfloat16)      # (Bt, V) each
              for c in range(n_ctx)]
    onehot = jnp.concatenate(pieces, axis=1)                     # (Bt, 2C*V)

    h = jnp.dot(onehot, m_ref[...], preferred_element_type=jnp.float32)
    h = jnp.maximum(h + b1_ref[...], 0.0)                        # (Bt, H) f32

    # Linear2 (bf16 operands, f32 accumulate)
    logits = jnp.dot(h.astype(jnp.bfloat16), w2_ref[...],
                     preferred_element_type=jnp.float32)
    logits = logits + b2_ref[...]                                # (Bt, V) f32

    # Numerically stable log_softmax over the vocab axis (f32)
    mx = jnp.max(logits, axis=-1, keepdims=True)
    z = logits - mx
    lse = jnp.log(jnp.sum(jnp.exp(z), axis=-1, keepdims=True))
    out_ref[...] = z - lse


# ------------------------------ host wrappers ------------------------------ #
def prepare_params(emb_table, w1, b1, w2, b2, context_size):
    """One-time conversion from PyTorch layout to kernel layout.

    Folds the embedding table into Linear1:
      M[c*V + v, :] = emb[v] @ W1.T[c*E:(c+1)*E, :]   (f32 compute, bf16 store)
    so the kernel's one-hot @ M reproduces gather + Linear1 exactly.
    """
    emb_f = jnp.asarray(emb_table, jnp.float32)          # (V, E)
    v, e = emb_f.shape
    w1_io = jnp.asarray(w1, jnp.float32).T               # (2C*E, H)
    n_ctx = 2 * context_size
    m_pieces = [emb_f @ w1_io[c * e:(c + 1) * e, :] for c in range(n_ctx)]
    m_fused = jnp.concatenate(m_pieces, axis=0).astype(jnp.bfloat16)  # (2C*V, H)
    return dict(
        m=m_fused,                                        # (2C*V, H) bf16
        b1=jnp.asarray(b1, jnp.float32).reshape(1, -1),   # (1, H)
        w2=jnp.asarray(w2, jnp.float32).T.astype(jnp.bfloat16),  # (H, V)
        b2=jnp.asarray(b2, jnp.float32).reshape(1, -1),   # (1, V)
    )


def cbow_forward(indices, m_fused, b1, w2, b2, *, block_b=None):
    """indices: (2*C,) int32 (module-faithful, returns (1, V)) or (B, 2*C)
    for a batch of contexts (returns (B, V)).  Params must already be in
    kernel layout (see prepare_params)."""
    idx2d = jnp.asarray(indices, jnp.int32)
    if idx2d.ndim == 1:
        idx2d = idx2d[None, :]
    batch, n_ctx = idx2d.shape
    two_c_v, hdim = m_fused.shape
    v = two_c_v // n_ctx

    if block_b is None:
        # Big batch tiles: fill the MXU's M dim and amortize grid-step
        # overhead; whole padded batch when it is smaller than 256.
        block_b = min(256, _round_up(batch, 8))
    block_b = _round_up(block_b, 8)
    b_pad = _round_up(batch, block_b)
    if b_pad != batch:
        idx2d = jnp.pad(idx2d, ((0, b_pad - batch), (0, 0)))
    grid = (b_pad // block_b,)

    flops = b_pad * (2 * two_c_v * hdim + 2 * hdim * v)
    bytes_accessed = (b_pad * n_ctx * 4 + two_c_v * hdim * 2 + hdim * v * 2
                      + (hdim + v) * 4 + b_pad * v * 4)

    out = pl.pallas_call(
        cbow_kernel,
        out_shape=jax.ShapeDtypeStruct((b_pad, v), jnp.float32),
        grid=grid,
        in_specs=[
            pl.BlockSpec((block_b, n_ctx), lambda i: (i, 0)),   # indices (tiled)
            pl.BlockSpec((two_c_v, hdim), lambda i: (0, 0)),    # fused emb@W1 (resident)
            pl.BlockSpec((1, hdim), lambda i: (0, 0)),          # b1
            pl.BlockSpec((hdim, v), lambda i: (0, 0)),          # w2 (resident)
            pl.BlockSpec((1, v), lambda i: (0, 0)),             # b2
        ],
        out_specs=pl.BlockSpec((block_b, v), lambda i: (i, 0)),
        compiler_params=pltpu.CompilerParams(
            dimension_semantics=("parallel",)),
        cost_estimate=pl.CostEstimate(
            flops=flops, transcendentals=b_pad * v,
            bytes_accessed=bytes_accessed),
    )(idx2d, m_fused, b1, w2, b2)
    return out[:batch]


def cbow_reference(idx2d, m_fused, b1, w2, b2):
    """Plain-JAX reference mirroring the kernel's numerics (bf16 fused table,
    f32 accumulation, bf16 operands into Linear2)."""
    batch, n_ctx = idx2d.shape
    two_c_v, hdim = m_fused.shape
    v = two_c_v // n_ctx
    m_f = m_fused.astype(jnp.float32)
    rows = idx2d + (jnp.arange(n_ctx, dtype=jnp.int32) * v)[None, :]   # (B, 2C)
    gathered = jnp.take(m_f, rows.reshape(-1), axis=0).reshape(batch, n_ctx, hdim)
    h = jnp.maximum(gathered.sum(axis=1) + b1, 0.0)
    logits = (h.astype(jnp.bfloat16).astype(jnp.float32)
              @ w2.astype(jnp.float32) + b2)
    return jax.nn.log_softmax(logits, axis=-1)


# --------------------------------- main ----------------------------------- #
if __name__ == "__main__":
    VOCAB_SIZE = 256
    EMBEDDING_DIM = 32
    CONTEXT_SIZE = 2
    IN_DIM = 2 * CONTEXT_SIZE * EMBEDDING_DIM   # 128
    HIDDEN = 128
    BATCH = 256                                 # batched contexts for the demo

    key = jax.random.PRNGKey(0)
    k_emb, k_w1, k_b1, k_w2, k_b2, k_idx = jax.random.split(key, 6)

    # Synthetic parameters in PyTorch layout (Linear: (out_features, in_features))
    emb_table = jax.random.normal(k_emb, (VOCAB_SIZE, EMBEDDING_DIM), jnp.float32)
    w1 = jax.random.normal(k_w1, (HIDDEN, IN_DIM), jnp.float32) * 0.05
    b1 = jax.random.normal(k_b1, (HIDDEN,), jnp.float32) * 0.05
    w2 = jax.random.normal(k_w2, (VOCAB_SIZE, HIDDEN), jnp.float32) * 0.05
    b2 = jax.random.normal(k_b2, (VOCAB_SIZE,), jnp.float32) * 0.05

    # One-time layout/dtype conversion + emb@W1 fusion (no per-call work)
    p = prepare_params(emb_table, w1, b1, w2, b2, CONTEXT_SIZE)

    idx_batch = jax.random.randint(k_idx, (BATCH, 2 * CONTEXT_SIZE), 0,
                                   VOCAB_SIZE, jnp.int32)

    fwd = jax.jit(cbow_forward, static_argnames=("block_b",))

    # Batched forward: 128-row tiles -> grid=2 so v7x's two TCs split the work
    out_b = fwd(idx_batch, p["m"], p["b1"], p["w2"], p["b2"], block_b=128)
    out_b = jax.block_until_ready(out_b)
    assert out_b.shape == (BATCH, VOCAB_SIZE)
    sums = jnp.sum(jnp.exp(out_b), axis=-1)
    assert jnp.allclose(sums, 1.0, atol=1e-3), f"log_softmax normalization off: {sums}"
    ref_b = cbow_reference(idx_batch, p["m"], p["b1"], p["w2"], p["b2"])
    err = float(jnp.max(jnp.abs(out_b - ref_b)))
    assert jnp.allclose(out_b, ref_b, atol=2e-2), f"batched mismatch: {err}"

    # Small batch with default block_b (single grid step, whole padded batch)
    out_s = fwd(idx_batch[:20], p["m"], p["b1"], p["w2"], p["b2"])
    out_s = jax.block_until_ready(out_s)
    assert out_s.shape == (20, VOCAB_SIZE)
    assert jnp.allclose(out_s, ref_b[:20], atol=2e-2), "small-batch mismatch"

    # Single-context, module-faithful path: (2*C,) -> (1, V)
    out_1 = fwd(idx_batch[0], p["m"], p["b1"], p["w2"], p["b2"])
    out_1 = jax.block_until_ready(out_1)
    assert out_1.shape == (1, VOCAB_SIZE)
    assert jnp.allclose(out_1, ref_b[:1], atol=2e-2), "single-context mismatch"

    print("KERNEL_OK")
</pallas_src>

<mosaic_0001>
module attributes {stable_mosaic.version = 11 : i64} {
  func.func @cbow_kernel(%arg0: i32, %arg1: memref<128x4xi32, #tpu.memory_space<vmem>>, %arg2: memref<1024x128xbf16, #tpu.memory_space<vmem>>, %arg3: memref<1x128xf32, #tpu.memory_space<vmem>>, %arg4: memref<128x256xbf16, #tpu.memory_space<vmem>>, %arg5: memref<1x256xf32, #tpu.memory_space<vmem>>, %arg6: memref<128x256xf32, #tpu.memory_space<vmem>>) attributes {dimension_semantics = [#tpu.dimension_semantics<parallel>], iteration_bounds = array<i64: 2>, scalar_prefetch = 0 : i64, scratch_operands = 0 : i64, tpu.core_type = #tpu.core_type<tc>, window_params = [{transform_indices = @transform_0, window_bounds = array<i64: 128, 4>}, {pipeline_mode = #tpu.pipeline_mode<synchronous>, transform_indices = @transform_1, window_bounds = array<i64: 1024, 128>}, {pipeline_mode = #tpu.pipeline_mode<synchronous>, transform_indices = @transform_2, window_bounds = array<i64: 1, 128>}, {pipeline_mode = #tpu.pipeline_mode<synchronous>, transform_indices = @transform_3, window_bounds = array<i64: 128, 256>}, {pipeline_mode = #tpu.pipeline_mode<synchronous>, transform_indices = @transform_4, window_bounds = array<i64: 1, 256>}, {transform_indices = @transform_5, window_bounds = array<i64: 128, 256>}]} {
    %c0 = arith.constant 0 : index
    %c0_0 = arith.constant 0 : index
    %0 = vector.load %arg1[%c0, %c0_0] : memref<128x4xi32, #tpu.memory_space<vmem>>, vector<128x4xi32>
    %1 = tpu.iota {dimensions = array<i32: 1>} : vector<128x256xi32>
    %2 = vector.extract_strided_slice %0 {offsets = [0, 0], sizes = [128, 1], strides = [1, 1]} : vector<128x4xi32> to vector<128x1xi32>
    %3 = vector.broadcast %2 : vector<128x1xi32> to vector<128x256xi32>
    %4 = arith.cmpi eq, %3, %1 : vector<128x256xi32>
    %5 = arith.extui %4 : vector<128x256xi1> to vector<128x256xi32>
    %6 = arith.sitofp %5 : vector<128x256xi32> to vector<128x256xf32>
    %7 = arith.truncf %6 : vector<128x256xf32> to vector<128x256xbf16>
    %8 = vector.extract_strided_slice %0 {offsets = [0, 1], sizes = [128, 1], strides = [1, 1]} : vector<128x4xi32> to vector<128x1xi32>
    %9 = vector.broadcast %8 : vector<128x1xi32> to vector<128x256xi32>
    %10 = arith.cmpi eq, %9, %1 : vector<128x256xi32>
    %11 = arith.extui %10 : vector<128x256xi1> to vector<128x256xi32>
    %12 = arith.sitofp %11 : vector<128x256xi32> to vector<128x256xf32>
    %13 = arith.truncf %12 : vector<128x256xf32> to vector<128x256xbf16>
    %14 = vector.extract_strided_slice %0 {offsets = [0, 2], sizes = [128, 1], strides = [1, 1]} : vector<128x4xi32> to vector<128x1xi32>
    %15 = vector.broadcast %14 : vector<128x1xi32> to vector<128x256xi32>
    %16 = arith.cmpi eq, %15, %1 : vector<128x256xi32>
    %17 = arith.extui %16 : vector<128x256xi1> to vector<128x256xi32>
    %18 = arith.sitofp %17 : vector<128x256xi32> to vector<128x256xf32>
    %19 = arith.truncf %18 : vector<128x256xf32> to vector<128x256xbf16>
    %20 = vector.extract_strided_slice %0 {offsets = [0, 3], sizes = [128, 1], strides = [1, 1]} : vector<128x4xi32> to vector<128x1xi32>
    %21 = vector.broadcast %20 : vector<128x1xi32> to vector<128x256xi32>
    %22 = arith.cmpi eq, %21, %1 : vector<128x256xi32>
    %23 = arith.extui %22 : vector<128x256xi1> to vector<128x256xi32>
    %24 = arith.sitofp %23 : vector<128x256xi32> to vector<128x256xf32>
    %25 = arith.truncf %24 : vector<128x256xf32> to vector<128x256xbf16>
    %26 = tpu.concatenate %7, %13, %19, %25 in 1 : vector<128x256xbf16>, vector<128x256xbf16>, vector<128x256xbf16>, vector<128x256xbf16> -> vector<128x1024xbf16>
    %c0_1 = arith.constant 0 : index
    %c0_2 = arith.constant 0 : index
    %27 = vector.load %arg2[%c0_1, %c0_2] : memref<1024x128xbf16, #tpu.memory_space<vmem>>, vector<1024x128xbf16>
    %cst = arith.constant dense<0.000000e+00> : vector<128x128xf32>
    %28 = tpu.matmul %26, %27, %cst {dimension_numbers = #tpu.dot_dimension_numbers<[1], [0], [0], [1], [0, 0, 1, 1], [], []>} : vector<128x1024xbf16>, vector<1024x128xbf16>, vector<128x128xf32> -> vector<128x128xf32>
    %c0_3 = arith.constant 0 : index
    %c0_4 = arith.constant 0 : index
    %29 = vector.load %arg3[%c0_3, %c0_4] : memref<1x128xf32, #tpu.memory_space<vmem>>, vector<1x128xf32>
    %30 = vector.broadcast %29 : vector<1x128xf32> to vector<128x128xf32>
    %31 = arith.addf %28, %30 : vector<128x128xf32>
    %cst_5 = arith.constant 0.000000e+00 : f32
    %32 = vector.broadcast %cst_5 : f32 to vector<128x128xf32>
    %33 = arith.maximumf %31, %32 : vector<128x128xf32>
    %34 = arith.truncf %33 : vector<128x128xf32> to vector<128x128xbf16>
    %c0_6 = arith.constant 0 : index
    %c0_7 = arith.constant 0 : index
    %35 = vector.load %arg4[%c0_6, %c0_7] : memref<128x256xbf16, #tpu.memory_space<vmem>>, vector<128x256xbf16>
    %cst_8 = arith.constant dense<0.000000e+00> : vector<128x256xf32>
    %36 = tpu.matmul %34, %35, %cst_8 {dimension_numbers = #tpu.dot_dimension_numbers<[1], [0], [0], [1], [0, 0, 1, 1], [], []>} : vector<128x128xbf16>, vector<128x256xbf16>, vector<128x256xf32> -> vector<128x256xf32>
    %c0_9 = arith.constant 0 : index
    %c0_10 = arith.constant 0 : index
    %37 = vector.load %arg5[%c0_9, %c0_10] : memref<1x256xf32, #tpu.memory_space<vmem>>, vector<1x256xf32>
    %38 = vector.broadcast %37 : vector<1x256xf32> to vector<128x256xf32>
    %39 = arith.addf %36, %38 : vector<128x256xf32>
    %cst_11 = arith.constant dense<0xFF800000> : vector<128xf32>
    %40 = vector.multi_reduction <maximumf>, %39, %cst_11 [1] : vector<128x256xf32> to vector<128xf32>
    %41 = vector.shape_cast %40 : vector<128xf32> to vector<128x1xf32>
    %42 = vector.broadcast %41 : vector<128x1xf32> to vector<128x256xf32>
    %43 = arith.subf %39, %42 : vector<128x256xf32>
    %44 = math.exp %43 : vector<128x256xf32>
    %cst_12 = arith.constant dense<0.000000e+00> : vector<128xf32>
    %45 = vector.multi_reduction <add>, %44, %cst_12 [1] : vector<128x256xf32> to vector<128xf32>
    %46 = vector.shape_cast %45 : vector<128xf32> to vector<128x1xf32>
    %47 = math.log %46 : vector<128x1xf32>
    %48 = vector.broadcast %47 : vector<128x1xf32> to vector<128x256xf32>
    %49 = arith.subf %43, %48 : vector<128x256xf32>
    %c0_13 = arith.constant 0 : index
    %c0_14 = arith.constant 0 : index
    %50 = vector.load %arg6[%c0_13, %c0_14] : memref<128x256xf32, #tpu.memory_space<vmem>>, vector<128x256xf32>
    tpu.vector_store %arg6[%c0_13, %c0_14], %49 {strides = array<i32>} : memref<128x256xf32, #tpu.memory_space<vmem>>, vector<128x256xf32>,
    return
  }
  func.func @transform_0(%arg0: i32) -> (i32, i32) {
    %c0_i32 = arith.constant 0 : i32
    %c0_i32_0 = arith.constant 0 : i32
    return %arg0, %c0_i32 : i32, i32
  }
  func.func @transform_1(%arg0: i32) -> (i32, i32) {
    %c0_i32 = arith.constant 0 : i32
    %c0_i32_0 = arith.constant 0 : i32
    %c0_i32_1 = arith.constant 0 : i32
    return %c0_i32, %c0_i32_0 : i32, i32
  }
  func.func @transform_2(%arg0: i32) -> (i32, i32) {
    %c0_i32 = arith.constant 0 : i32
    %c0_i32_0 = arith.constant 0 : i32
    %c0_i32_1 = arith.constant 0 : i32
    return %c0_i32, %c0_i32_0 : i32, i32
  }
  func.func @transform_3(%arg0: i32) -> (i32, i32) {
    %c0_i32 = arith.constant 0 : i32
    %c0_i32_0 = arith.constant 0 : i32
    %c0_i32_1 = arith.constant 0 : i32
    return %c0_i32, %c0_i32_0 : i32, i32
  }
  func.func @transform_4(%arg0: i32) -> (i32, i32) {
    %c0_i32 = arith.constant 0 : i32
    %c0_i32_0 = arith.constant 0 : i32
    %c0_i32_1 = arith.constant 0 : i32
    return %c0_i32, %c0_i32_0 : i32, i32
  }
  func.func @transform_5(%arg0: i32) -> (i32, i32) {
    %c0_i32 = arith.constant 0 : i32
    %c0_i32_0 = arith.constant 0 : i32
    return %arg0, %c0_i32 : i32, i32
  }
}

</mosaic_0001>

<bundles_post_ra>
// kernel: cbow_forward.1
= control target key start
LH: loop header
LB: loop body
LE: loop exit
PB: predicated region body
PF: predicated region fallthrough
CT: control target
= control target key end

     0   :  { %10 = vsyncpa [#allocation3], 0  ;;  %s4527_s0 = inlined_call_operand.vmem [shape: s32[256,4], index: 0, kind: input, shape index: {}]   ;;  %s4528_s1 = inlined_call_operand.hbm [shape: bf16[1024,128], index: 1, kind: input, shape index: {}]   ;;  %s4529_s2 = inlined_call_operand.vmem [shape: f32[1,128], index: 2, kind: input, shape index: {}]   ;;  %s4530_s3 = inlined_call_operand.vmem [shape: bf16[128,256], index: 3, kind: input, shape index: {}]   ;;  %s4531_s4 = inlined_call_operand.vmem [shape: f32[1,256], index: 4, kind: input, shape index: {}]   ;;  %s4532_s5 = inlined_call_operand.hbm [shape: f32[256,256], index: 5, kind: output, shape index: {}]  }
   0x1   :  { %11 = vsyncpa [#allocation4], 0 }
   0x2   :  { %13 = vsyncpa [#allocation4 + $0x1], 0  ;;  %s3468_s18 = smov 0   ;;  %s3470_s19 = smov 0  }
   0x3   :  { %s3472_s20 = smov 0   ;;  %s3474_s21 = smov 0  }
   0x4 LB: > { %s3489_s22 = sadd.s32 4294967295, %s3425_s21   ;;  %s2430_s23 = sadd.s32 4294967294, %s3425_s21   ;;  %s3425_s21 = sphi %s3474_s21, %s4542_s21   ;;  %s3421_s20 = sphi %s3472_s20, %s4541_s20   ;;  %s3417_s19 = sphi %s3470_s19, %s4540_s19   ;;  %s3413_s18 = sphi %s3468_s18, %s4539_s18  }
   0x5   : > { %s3493_s24 = sadd.s32 1, %s3425_s21   ;;  %s136_s25 = sadd.s32 1, %s3421_s20 }
   0x6   : > { %s133_s26 = ssub.s32 %s3425_s21, %s3493_s24  ;;  %p146_p0 = scmp.ne.s32.totalorder %s3421_s20, %s3417_s19 }
   0x7   : > { %p134_p1 = scmp.eq.s32.totalorder %s133_s26, 0  ;;  %p147_p2 = scmp.eq.s32.totalorder %s3489_s22, 1 }
   0x8   : > { %p152_p3 = scmp.ne.s32.totalorder %s3417_s19, %s3413_s18  ;;  %p153_p4 = scmp.eq.s32.totalorder %s2430_s23, 1 }
   0x9   : > { %s3504_s27 = scalar_select %p134_p1, %s3421_s20, %s136_s25  }
   0xa   : > { %p3506_p5 = por %p147_p2, %p146_p0  ;;  %p3510_p6 = por %p153_p4, %p152_p3 }
   0xb   : > { %p2431_p7 = scmp.ge.s32.totalorder %s3425_s21, 1  ;;  %p160_p8 = scmp.lt.s32.totalorder %s3425_s21, 3 }
   0xc   : > { %s4534_s29 = scalar_select %p3510_p6, 1, 0 }
   0xd   : > { %p3070_p9 = scmp.eq.s32.totalorder %s3489_s22, 0  ;;  %p3517_p10 = pnand %p2431_p7, %p160_p8 }
   0xe   : > { %s3427_s6 = smov [#allocation2]  }
   0xf   : > { %s172_s7 = sshll.u32 %s3427_s6, 4  ;;  %p3062_p11 = pneg %p3517_p10  ;;  %s173_s7 = int_to_ptr.vmem [resolvable:$true] %s172_s7 }
  0x10   : > { %s3346_s8 = scalar_lea.vmem %s173_s7, 8192  ;;  %p3354_p3 = scmp.lt.s32.totalorder %s173_s7, %s173_s7 }
  0x11   : > { %p3063_p12 = pnand %p3070_p9, %p3062_p11  ;;  %p3347_p0 = scmp.ne.s32.totalorder %s173_s7, %s3346_s8 }
  0x12   : > { %p3355_p4 = scmp.lt.s32.totalorder %s3346_s8, %s3346_s8 }
  0x13   : > { %p3337_p13 = pneg %p3063_p12 }
  0x14   : > { %p3356_p6 = por %p3355_p4, %p3354_p3 }
  0x15   : > { %p3349_p1 = pnand %p3347_p0, %p3337_p13 }
  0x17   : > { %p3350_p2 = pneg %p3349_p1 }
  0x19   : > { %p3357_p7 = pnand %p3356_p6, %p3350_p2 }
  0x1b   : > { %3360 = shalt.err (!%p3357_p7)
}
  0x1c   : > { %s3428_s9 = smov 64   ;;  %s3429_s10 = smov 4  }
  0x1d   : > { %3065 = dma.hbm_to_vmem [thread:$0]  (!%p3063_p12), %s4528_s1, 8192, %s173_s7, [#allocation3], %s3428_s9, %s3428_s9, %s3429_s10  }
  0x1e   : > { %206 = sbr.rel (%p3517_p10) target bundleno = 1083 (0x43b), region = 40 }
  0x23   : > { %3404 = dma.done.wait (%p3070_p9), [#allocation3], 8192  }
  0x24   : > { %3406 = vsyncadd (%p3070_p9), [#allocation3], 4294959104  ;;  %s2437_s13 = sshll.u32 %s3489_s22, 4  ;;  %v3430_v0 = vmov 0   ;;  %v3151_v7 = vld [vmem:[#allocation2 + $0x78] sm:$0xff]   ;;  %v3153_v10 = vld [vmem:[#allocation2 + $0x70] sm:$0xff]   ;;  %v258_v38 = vlaneseq }
  0x25   : > { %3116 = vset.pattern.permute.xlu1 %v3430_v0  ;;  %3115 = vset.pattern.permute.xlu0 %v3430_v0  ;;  %p235_p6 = scmp.lt.s32.totalorder %s2437_s13, 31  ;;  %v3152_v8 = vld [vmem:[#allocation2 + $0x38] sm:$0xff]   ;;  %v3154_v12 = vld [vmem:[#allocation2 + $0x30] sm:$0xff]   ;;  %v3155_v13 = vld [vmem:[#allocation2 + $0x68] sm:$0xff]   ;;  %v3431_v18 = vmov 1   ;;  %v3432_v36 = vmov 2  }
  0x26   : > { %3040 = vmatprep.subr.bf16.mxu1 %v3151_v7  ;;  %2784 = vmatprep.subr.bf16.mxu0 %v3151_v7  ;;  %v3156_v16 = vld [vmem:[#allocation2 + $0x28] sm:$0xff]   ;;  %v3157_v17 = vld [vmem:[#allocation2 + $0x60] sm:$0xff]   ;;  %v3159_v22 = vld [vmem:[#allocation2 + $0x58] sm:$0xff]   ;;  %v3433_v37 = vmov 3   ;;  %v3669_v39 = vand.u32 127, %v258_v38  ;;  %s231_s6 = sand.u32 1, %s3417_s19  }
  0x27   : > { %s4544_s13 = smov (!%p235_p6, %s2437_s13), 31  ;;  %3048 = vmatpush3.bf16.msra.mxu1 %v3152_v8  ;;  %2785 = vmatpush3.bf16.msra.mxu0 %v3152_v8  ;;  %v3158_v21 = vld [vmem:[#allocation2 + $0x20] sm:$0xff]   ;;  %v3160_v25 = vld [vmem:[#allocation2 + $0x18] sm:$0xff]   ;;  %v3161_v26 = vld [vmem:[#allocation2 + $0x50] sm:$0xff]   ;;  %v3434_v47 = vmov 1.0|1.0  }
  0x28   : > { %s2438_s14 = sshll.u32 %s4544_s13, 3  ;;  %3041 = vmatprep.subr.bf16.mxu1 %v3153_v10  ;;  %2786 = vmatprep.subr.bf16.mxu0 %v3153_v10  ;;  %v3162_v29 = vld [vmem:[#allocation2 + $0x10] sm:$0xff]   ;;  %v3163_v30 = vld [vmem:[#allocation2 + $0x48] sm:$0xff]   ;;  %v3165_v32 = vld [vmem:[#allocation2 + $0x40] sm:$0xff]   ;;  %v3673_v42 = vadd.s32 128, %v3669_v39  ;;  %s2436_s7 = sshll.u32 %s231_s6, 8 }
  0x29   : > { %s3540_s17 = scalar_lea.vmem %s4527_s0, %s2438_s14  ;;  %v3164_v31 = vld [vmem:[#allocation2 + $0x8] sm:$0xff]   ;;  %v3166_v33 = vld [vmem:[#allocation2] sm:$0xff]   ;;  %v3167_v34 = vld [vmem:[#allocation2 + $0xf8] sm:$0xff]   ;;  %s4412_s8 = scalar_lea.vmem [#allocation5], %s2436_s7 }
  0x2a   : > { %v3543_v1 = vld [vmem:[%s3540_s17 + $0x50] sm:$0xff]  ;;  %v3546_v2 = vld [vmem:[%s3540_s17 + $0x40] sm:$0xff]  ;;  %v3551_v3 = vld [vmem:[%s3540_s17 + $0x58] sm:$0xff]  ;;  %s2783_s9 = sshll.u32 %s3489_s22, 12  ;;  %s2356_s10 = sshll.u32 %s4412_s8, 4  ;;  %s4479_s10 = int_to_ptr.vmem [resolvable:$true] %s2356_s10 }
  0x2b   : > { %292 = vperm.xlu1 %3116, %v3543_v1   ;;  %286 = vperm.xlu0 %3115, %v3546_v2   ;;  %v3554_v4 = vld [vmem:[%s3540_s17 + $0x48] sm:$0xff]  ;;  %v3562_v6 = vld [vmem:[%s3540_s17 + $0x60] sm:$0xff]  ;;  %v3565_v9 = vld [vmem:[%s3540_s17 + $0x78] sm:$0xff]  ;;  %s4477_s13 = scalar_lea.hbm %s4532_s5, %s2783_s9  ;;  %s4487_s22 = scalar_lea.sflag [#allocation4], %s231_s6 }
  0x2c   : > { %v3557_v5 = vld [vmem:[%s3540_s17 + $0x68] sm:$0xff]  ;;  %v3570_v11 = vld [vmem:[%s3540_s17 + $0x70] sm:$0xff]  ;;  %v3578_v15 = vld [vmem:[%s3540_s17] sm:$0xff]  ;;  %3049 = vmatpush3.bf16.msra.mxu1 %v3154_v12  ;;  %2787 = vmatpush3.bf16.msra.mxu0 %v3154_v12  ;;  %s3361_s14 = scalar_lea.vmem %s4479_s10, 4096  ;;  %s3435_s15 = smov [#allocation5]  }
  0x2d   : > { %v3575_v14 = vld [vmem:[%s3540_s17 + $0x8] sm:$0xff]  ;;  %3042 = vmatprep.subr.bf16.mxu1 %v3155_v13  ;;  %2788 = vmatprep.subr.bf16.mxu0 %v3155_v13  ;;  %v3583_v19 = vld [vmem:[%s3540_s17 + $0x10] sm:$0xff]  ;;  %v3588_v20 = vld [vmem:[%s3540_s17 + $0x18] sm:$0xff]  ;;  %p3362_p8 = scmp.ne.s32.totalorder %s4479_s10, %s3361_s14  ;;  %s3365_s16 = sshll.u32 %s3435_s15, 4  ;;  %s3366_s16 = int_to_ptr.vmem [resolvable:$false] %s3365_s16 }
  0x2e   : > { %v3591_v23 = vld [vmem:[%s3540_s17 + $0x20] sm:$0xff]  ;;  %v3596_v24 = vld [vmem:[%s3540_s17 + $0x28] sm:$0xff]  ;;  %v3599_v27 = vld [vmem:[%s3540_s17 + $0x30] sm:$0xff]  ;;  %p3368_p11 = scmp.lt.s32.totalorder %s4479_s10, %s3366_s16 }
  0x2f   : > { %295 = vperm.xlu1 %3116, %v3551_v3   ;;  %289 = vperm.xlu0 %3115, %v3554_v4   ;;  %v3604_v28 = vld [vmem:[%s3540_s17 + $0x38] sm:$0xff]  ;;  %v3169_v46 = vld [vmem:[#allocation2 + $0xf0] sm:$0xff]   ;;  %v3171_v51 = vld [vmem:[#allocation2 + $0xe8] sm:$0xff]   ;;  %p3363_p9 = pnand %p3362_p8, %p3506_p5  ;;  %s3367_s17 = scalar_lea.vmem %s3366_s16, 8192 }
  0x30   : > { %3050 = vmatpush3.bf16.msra.mxu1 %v3156_v16  ;;  %2789 = vmatpush3.bf16.msra.mxu0 %v3156_v16  ;;  %v3183_v35 = vld [vmem:[#allocation2 + $0x178] sm:$0xff]   ;;  %v3170_v50 = vld [vmem:[#allocation2 + $0xb0] sm:$0xff]   ;;  %v3172_v54 = vld [vmem:[#allocation2 + $0xa8] sm:$0xff]   ;;  %p3369_p12 = scmp.lt.s32.totalorder %s3367_s17, %s3361_s14 }
  0x31   : > { %3043 = vmatprep.subr.bf16.mxu1 %v3157_v17  ;;  %2790 = vmatprep.subr.bf16.mxu0 %v3157_v17  ;;  %v3168_v45 = vld [vmem:[#allocation2 + $0xb8] sm:$0xff]   ;;  %v3173_v55 = vld [vmem:[#allocation2 + $0xe0] sm:$0xff]   ;;  %v3177_v63 = vld [vmem:[#allocation2 + $0xd0] sm:$0xff]   ;;  %p3364_p10 = pneg %p3363_p9 }
  0x32   : > { %v3174_v58 = vld [vmem:[#allocation2 + $0xa0] sm:$0xff]   ;;  %v3175_v59 = vld [vmem:[#allocation2 + $0xd8] sm:$0xff]   ;;  %v3179_v7 = vld [vmem:[#allocation2 + $0xc8] sm:$0xff]   ;;  %p3370_p13 = por %p3369_p12, %p3368_p11 }
  0x33   : > { %301 = vperm.xlu1 %3116, %v3557_v5   ;;  %298 = vperm.xlu0 %3115, %v3562_v6   ;;  %v3176_v62 = vld [vmem:[#allocation2 + $0x98] sm:$0xff]  }
  0x34   : > { %3051 = vmatpush3.bf16.msra.mxu1 %v3158_v21  ;;  %2791 = vmatpush3.bf16.msra.mxu0 %v3158_v21  ;;  %v3187_v21 = vld [vmem:[#allocation2 + $0x170] sm:$0xff]   ;;  %p3371_p0 = pnand %p3370_p13, %p3364_p10 }
  0x35   : > { %3044 = vmatprep.subr.bf16.mxu1 %v3159_v22  ;;  %2792 = vmatprep.subr.bf16.mxu0 %v3159_v22 }
  0x37   : > { %307 = vperm.xlu1 %3116, %v3565_v9   ;;  %304 = vperm.xlu0 %3115, %v3570_v11  }
  0x38   : > { %3052 = vmatpush3.bf16.msra.mxu1 %v3160_v25  ;;  %2793 = vmatpush3.bf16.msra.mxu0 %v3160_v25  ;;  %v3188_v25 = vld [vmem:[#allocation2 + $0x130] sm:$0xff]  }
  0x39   : > { %3045 = vmatprep.subr.bf16.mxu1 %v3161_v26  ;;  %2794 = vmatprep.subr.bf16.mxu0 %v3161_v26  ;;  %v3189_v26 = vld [vmem:[#allocation2 + $0x168] sm:$0xff]  }
  0x3b   : > { %3118 = vset.pattern.permute.xlu1 %v3431_v18  ;;  %3117 = vset.pattern.permute.xlu0 %v3431_v18 }
  0x3c   : > { %425 = vperm.xlu1 %3118, %v3575_v14   ;;  %422 = vperm.xlu0 %3117, %v3578_v15  }
  0x3d   : > { %3053 = vmatpush3.bf16.msra.mxu1 %v3162_v29  ;;  %2795 = vmatpush3.bf16.msra.mxu0 %v3162_v29  ;;  %v3190_v29 = vld [vmem:[#allocation2 + $0x128] sm:$0xff]  }
  0x3e   : > { %3046 = vmatprep.subr.bf16.mxu1 %v3163_v30  ;;  %2796 = vmatprep.subr.bf16.mxu0 %v3163_v30  ;;  %v3203_v30 = vld [vmem:[#allocation2 + $0x1e0] sm:$0xff]  }
  0x40   : > { %428 = vperm.xlu1 %3118, %v3583_v19   ;;  %431 = vperm.xlu0 %3117, %v3588_v20  }
  0x41   : > { %3054 = vmatpush3.bf16.msra.mxu1 %v3164_v31  ;;  %2797 = vmatpush3.bf16.msra.mxu0 %v3164_v31  ;;  %v3193_v31 = vld [vmem:[#allocation2 + $0x160] sm:$0xff]  }
  0x42   : > { %3047 = vmatprep.subr.bf16.mxu1 %v3165_v32  ;;  %2798 = vmatprep.subr.bf16.mxu0 %v3165_v32  ;;  %v3204_v32 = vld [vmem:[#allocation2 + $0x1a0] sm:$0xff]  }
  0x44   : > { %434 = vperm.xlu1 %3118, %v3591_v23   ;;  %437 = vperm.xlu0 %3117, %v3596_v24  }
  0x45   : > { %3055 = vmatpush3.bf16.msra.mxu1 %v3166_v33  ;;  %2799 = vmatpush3.bf16.msra.mxu0 %v3166_v33 }
  0x46   : > { %2848 = vmatprep.subr.bf16.mxu1 %v3167_v34  ;;  %2912 = vmatprep.subr.bf16.mxu0 %v3183_v35  ;;  %v3194_v34 = vld [vmem:[#allocation2 + $0x120] sm:$0xff]   ;;  %v3195_v35 = vld [vmem:[#allocation2 + $0x158] sm:$0xff]  }
  0x48   : > { %440 = vperm.xlu1 %3118, %v3599_v27   ;;  %443 = vperm.xlu0 %3117, %v3604_v28  }
  0x4c   : > { %3119 = vset.pattern.permute.xlu1 %v3430_v0  ;;  %452 = vperm.xlu0 %3117, %v3543_v1  }
  0x4d   : > { %262 = vperm.xlu1 %3119, %v3578_v15  }
  0x50   : > { %3122 = vset.pattern.permute.xlu0 %v3430_v0 }
  0x51   : > { %3120 = vset.pattern.permute.xlu1 %v3431_v18  ;;  %265 = vperm.xlu0 %3122, %v3575_v14  }
  0x52   : > { %446 = vperm.xlu1 %3120, %v3546_v2  }
  0x55   : > { %268 = vperm.xlu0 %3122, %v3583_v19  }
  0x56   : > { %449 = vperm.xlu1 %3120, %v3554_v4  }
  0x59   : > { %277 = vperm.xlu0 %3122, %v3596_v24  }
  0x5a   : > { %3121 = vset.pattern.permute.xlu1 %v3430_v0 }
  0x5b   : > { %271 = vperm.xlu1 %3121, %v3588_v20  }
  0x5d   : > { %280 = vperm.xlu0 %3122, %v3599_v27  }
  0x5f   : > { %3123 = vset.pattern.permute.xlu1 %v3431_v18 }
  0x60   : > { %455 = vperm.xlu1 %3123, %v3551_v3  }
  0x61   : > { %3127 = vset.pattern.permute.xlu0 %v3431_v18 }
  0x62   : > { %464 = vperm.xlu0 %3127, %v3570_v11  }
  0x64   : > { %3124 = vset.pattern.permute.xlu1 %v3430_v0 }
  0x65   : > { %274 = vperm.xlu1 %3124, %v3591_v23  }
  0x66   : > { %3130 = vset.pattern.permute.xlu0 %v3432_v36 }
  0x67   : > { %585 = vperm.xlu0 %3130, %v3575_v14  }
  0x69   : > { %3125 = vset.pattern.permute.xlu1 %v3431_v18 }
  0x6a   : > { %458 = vperm.xlu1 %3125, %v3562_v6  }
  0x6b   : > { %588 = vperm.xlu0 %3130, %v3583_v19  }
  0x6e   : > { %461 = vperm.xlu1 %3125, %v3557_v5  }
  0x6f   : > { %597 = vperm.xlu0 %3130, %v3596_v24  }
  0x72   : > { %3126 = vset.pattern.permute.xlu1 %v3430_v0 }
  0x73   : > { %283 = vperm.xlu1 %3126, %v3604_v28   ;;  %3135 = vset.pattern.permute.xlu0 %v3433_v37 }
  0x74   : > { %748 = vperm.xlu0 %3135, %v3583_v19   ;;  %v3186_v19 = vld [vmem:[#allocation2 + $0x1b8] sm:$0xff]  }
  0x77   : > { %3128 = vset.pattern.permute.xlu1 %v3431_v18 }
  0x78   : > { %467 = vperm.xlu1 %3128, %v3565_v9   ;;  %760 = vperm.xlu0 %3135, %v3599_v27  }
  0x7c   : > { %3129 = vset.pattern.permute.xlu1 %v3432_v36  ;;  %3138 = vset.pattern.permute.xlu0 %v3432_v36 }
  0x7d   : > { %582 = vperm.xlu1 %3129, %v3578_v15   ;;  %600 = vperm.xlu0 %3138, %v3599_v27  }
  0x81   : > { %3131 = vset.pattern.permute.xlu1 %v3433_v37  ;;  %609 = vperm.xlu0 %3138, %v3554_v4  }
  0x82   : > { %742 = vperm.xlu1 %3131, %v3578_v15   ;;  %v3185_v15 = vld [vmem:[#allocation2 + $0x1f8] sm:$0xff]  }
  0x85   : > { %612 = vperm.xlu0 %3138, %v3543_v1  }
  0x86   : > { %745 = vperm.xlu1 %3131, %v3575_v14   ;;  %v3182_v14 = vld [vmem:[#allocation2 + $0x80] sm:$0xff]  }
  0x89   : > { %3143 = vset.pattern.permute.xlu0 %v3433_v37 }
  0x8a   : > { %3132 = vset.pattern.permute.xlu1 %v3432_v36  ;;  %772 = vperm.xlu0 %3143, %v3543_v1  }
  0x8b   : > { %591 = vperm.xlu1 %3132, %v3588_v20  }
  0x8e   : > { %3146 = vset.pattern.permute.xlu0 %v3432_v36 }
  0x8f   : > { %3133 = vset.pattern.permute.xlu1 %v3433_v37  ;;  %621 = vperm.xlu0 %3146, %v3557_v5  }
  0x90   : > { %751 = vperm.xlu1 %3133, %v3588_v20   ;;  %v3191_v20 = vld [vmem:[#allocation2 + $0x1f0] sm:$0xff]  }
  0x93   : > { %624 = vperm.xlu0 %3146, %v3570_v11  }
  0x94   : > { %3134 = vset.pattern.permute.xlu1 %v3432_v36 }
  0x95   : > { %594 = vperm.xlu1 %3134, %v3591_v23  }
  0x97   : > { %3149 = vset.pattern.permute.xlu0 %v3433_v37 }
  0x98   : > { %784 = vperm.xlu0 %3149, %v3570_v11   ;;  %v3180_v11 = vld [vmem:[#allocation2 + $0x88] sm:$0xff]  }
  0x99   : > { %3136 = vset.pattern.permute.xlu1 %v3433_v37 }
  0x9a   : > { %754 = vperm.xlu1 %3136, %v3591_v23   ;;  %v3192_v23 = vld [vmem:[#allocation2 + $0x1b0] sm:$0xff]  }
  0x9e   : > { %757 = vperm.xlu1 %3136, %v3596_v24  }
  0xa2   : > { %3137 = vset.pattern.permute.xlu1 %v3432_v36 }
  0xa3   : > { %603 = vperm.xlu1 %3137, %v3604_v28  }
  0xa6   : > { %v293_v40 = vpop.permute.xlu1 %292  ;;  %v287_v41 = vpop.permute.xlu0 %286 }
  0xa7   : > { %3139 = vset.pattern.permute.xlu1 %v3433_v37  ;;  %vm325_vm0 = vcmp.eq.s32.totalorder %v287_v41, %v3669_v39  ;;  %vm326_vm1 = vcmp.eq.s32.totalorder %v287_v41, %v3673_v42  ;;  %vm330_vm7 = vcmp.eq.s32.totalorder %v293_v40, %v3673_v42  ;;  %vm329_vm12 = vcmp.eq.s32.totalorder %v293_v40, %v3669_v39  ;;  %v3196_v40 = vld [vmem:[#allocation2 + $0x118] sm:$0xff]  }
  0xa8   : > { %763 = vperm.xlu1 %3139, %v3604_v28   ;;  %v3198_v28 = vld [vmem:[#allocation2 + $0x1a8] sm:$0xff]  }
  0xaa   : > { %v296_v43 = vpop.permute.xlu1 %295  ;;  %v290_v44 = vpop.permute.xlu0 %289 }
  0xab   : > { %vm327_vm2 = vcmp.eq.s32.totalorder %v290_v44, %v3669_v39  ;;  %vm328_vm3 = vcmp.eq.s32.totalorder %v290_v44, %v3673_v42  ;;  %vm332_vm4 = vcmp.eq.s32.totalorder %v296_v43, %v3673_v42  ;;  %vm331_vm9 = vcmp.eq.s32.totalorder %v296_v43, %v3669_v39  ;;  %v3199_v43 = vld [vmem:[#allocation2 + $0x150] sm:$0xff]  }
  0xac   : > { %vm2650_vm5 = vmpackc.low %vm327_vm2, %vm325_vm0  ;;  %3140 = vset.pattern.permute.xlu1 %v3432_v36  ;;  %v3209_v44 = vld [vmem:[#allocation2 + $0x1d0] sm:$0xff]  }
  0xad   : > { %vm2648_vm6 = vmpackc.low %vm328_vm3, %vm326_vm1  ;;  %606 = vperm.xlu1 %3140, %v3546_v2  }
  0xae   : > { %2649 = vmatprep.mubr.msk.bf16.mxu1 %vm2648_vm6, %v3434_v47  ;;  %v302_v48 = vpop.permute.xlu1 %301  ;;  %v299_v49 = vpop.permute.xlu0 %298  ;;  %vm2652_vm8 = vmpackc.low %vm332_vm4, %vm330_vm7 }
  0xaf   : > { %2651 = vmatmul.mubr.msk.bf16.vlgmr.msra.gmra.mxu1 %vm2650_vm5, %v3434_v47  ;;  %vm336_vm10 = vcmp.eq.s32.totalorder %v302_v48, %v3673_v42  ;;  %vm334_vm11 = vcmp.eq.s32.totalorder %v299_v49, %v3673_v42  ;;  %vm2654_vm13 = vmpackc.low %vm331_vm9, %vm329_vm12  ;;  %vm335_vm15 = vcmp.eq.s32.totalorder %v302_v48, %v3669_v39  ;;  %vm333_vm0 = vcmp.eq.s32.totalorder %v299_v49, %v3669_v39  ;;  %v3201_v48 = vld [vmem:[#allocation2 + $0x148] sm:$0xff]  }
  0xb0   : > { %2653 = vmatprep.mubr.msk.bf16.mxu1 %vm2652_vm8, %v3434_v47  ;;  %2849 = vmatpush3.bf16.msra.mxu1 %v3168_v45  ;;  %vm2656_vm14 = vmpackc.low %vm336_vm10, %vm334_vm11  ;;  %v3210_v45 = vld [vmem:[#allocation2 + $0x190] sm:$0xff]  }
  0xb1   : > { %3141 = vset.pattern.permute.xlu1 %v3433_v37  ;;  %2850 = vmatprep.subr.bf16.mxu1 %v3169_v46  ;;  %vm2658_vm3 = vmpackc.low %vm335_vm15, %vm333_vm0  ;;  %v3200_v46 = vld [vmem:[#allocation2 + $0x110] sm:$0xff]  }
  0xb2   : > { %v308_v52 = vpop.permute.xlu1 %307  ;;  %v305_v53 = vpop.permute.xlu0 %304  ;;  %766 = vperm.xlu1 %3141, %v3546_v2  }
  0xb3   : > { %vm340_vm1 = vcmp.eq.s32.totalorder %v308_v52, %v3673_v42  ;;  %vm338_vm2 = vcmp.eq.s32.totalorder %v305_v53, %v3673_v42  ;;  %vm339_vm5 = vcmp.eq.s32.totalorder %v308_v52, %v3669_v39  ;;  %vm337_vm6 = vcmp.eq.s32.totalorder %v305_v53, %v3669_v39  ;;  %v3202_v52 = vld [vmem:[#allocation2 + $0x108] sm:$0xff]   ;;  %v3213_v53 = vld [vmem:[#allocation2 + $0x1c0] sm:$0xff]  }
  0xb4   : > { %2851 = vmatpush3.bf16.msra.mxu1 %v3170_v50  ;;  %vm2660_vm4 = vmpackc.low %vm340_vm1, %vm338_vm2  ;;  %v3211_v50 = vld [vmem:[#allocation2 + $0x1c8] sm:$0xff]  }
  0xb5   : > { %2852 = vmatprep.subr.bf16.mxu1 %v3171_v51  ;;  %vm2662_vm9 = vmpackc.low %vm339_vm5, %vm337_vm6  ;;  %v3212_v51 = vld [vmem:[#allocation2 + $0x188] sm:$0xff]  }
  0xb6   : > { %769 = vperm.xlu1 %3141, %v3554_v4   ;;  %v3178_v4 = vld [vmem:[#allocation2 + $0x90] sm:$0xff]  }
  0xb7   : > { %2655 = vmatmul.mubr.msk.bf16.gmra.mxu1 %vm2654_vm13, %v3434_v47  ;;  %v426_v56 = vpop.permute.xlu1 %425  ;;  %v423_v57 = vpop.permute.xlu0 %422 }
  0xb8   : > { %2657 = vmatprep.mubr.msk.bf16.mxu1 %vm2656_vm14, %v3434_v47  ;;  %2853 = vmatpush3.bf16.msra.mxu1 %v3172_v54  ;;  %vm472_vm7 = vcmp.eq.s32.totalorder %v426_v56, %v3673_v42  ;;  %vm470_vm8 = vcmp.eq.s32.totalorder %v423_v57, %v3673_v42  ;;  %vm471_vm11 = vcmp.eq.s32.totalorder %v426_v56, %v3669_v39 }
  0xb9   : > { %2854 = vmatprep.subr.bf16.mxu1 %v3173_v55  ;;  %vm2664_vm10 = vmpackc.low %vm472_vm7, %vm470_vm8  ;;  %vm469_vm12 = vcmp.eq.s32.totalorder %v423_v57, %v3669_v39  ;;  %v3205_v55 = vld [vmem:[#allocation2 + $0x140] sm:$0xff]  }
  0xba   : > { %3142 = vset.pattern.permute.xlu1 %v3432_v36  ;;  %vm2666_vm15 = vmpackc.low %vm471_vm11, %vm469_vm12  ;;  %v3214_v57 = vld [vmem:[#allocation2 + $0x180] sm:$0xff]  }
  0xbb   : > { %v3699_v60 = vpop.permute.xlu1 %428  ;;  %615 = vperm.xlu1 %3142, %v3551_v3   ;;  %v3702_v61 = vpop.permute.xlu0 %431 }
  0xbc   : > { %2855 = vmatpush3.bf16.msra.mxu1 %v3174_v58  ;;  %vm474_vm13 = vcmp.eq.s32.totalorder %v3699_v60, %v3673_v42  ;;  %vm476_vm14 = vcmp.eq.s32.totalorder %v3702_v61, %v3673_v42  ;;  %vm473_vm7 = vcmp.eq.s32.totalorder %v3699_v60, %v3669_v39  ;;  %vm475_vm8 = vcmp.eq.s32.totalorder %v3702_v61, %v3669_v39  ;;  %v3206_v58 = vld [vmem:[#allocation2 + $0x100] sm:$0xff]  }
  0xbd   : > { %2856 = vmatprep.subr.bf16.mxu1 %v3175_v59  ;;  %vm3736_vm0 = vmpackc.low %vm476_vm14, %vm474_vm13 }
  0xbe   : > { %vm2670_vm12 = vmpackc.low %vm475_vm8, %vm473_vm7 }
  0xbf   : > { %2659 = vmatmul.mubr.msk.bf16.gmra.mxu1 %vm2658_vm3, %v3434_v47  ;;  %v3707_v1 = vpop.permute.xlu1 %434  ;;  %3144 = vset.pattern.permute.xlu1 %v3433_v37  ;;  %v3710_v2 = vpop.permute.xlu0 %437 }
  0xc0   : > { %2661 = vmatprep.mubr.msk.bf16.mxu1 %vm2660_vm4, %v3434_v47  ;;  %2857 = vmatpush3.bf16.msra.mxu1 %v3176_v62 }
  0xc1   : > { %775 = vperm.xlu1 %3144, %v3551_v3   ;;  %2858 = vmatprep.subr.bf16.mxu1 %v3177_v63  ;;  %v3181_v3 = vld [vmem:[#allocation2 + $0xc0] sm:$0xff]  }
  0xc3   : > { %v3716_v8 = vpop.permute.xlu1 %440  ;;  %v3718_v10 = vpop.permute.xlu0 %443 }
  0xc4   : > { %2859 = vmatpush3.bf16.msra.mxu1 %v3178_v4 }
  0xc5   : > { %3145 = vset.pattern.permute.xlu1 %v3432_v36  ;;  %2860 = vmatprep.subr.bf16.mxu1 %v3179_v7 }
  0xc6   : > { %618 = vperm.xlu1 %3145, %v3562_v6  }
  0xc7   : > { %2663 = vmatmul.mubr.msk.bf16.gmra.mxu1 %vm2662_vm9, %v3434_v47  ;;  %v3725_v12 = vpop.permute.xlu0 %452  ;;  %vm478_vm9 = vcmp.eq.s32.totalorder %v3707_v1, %v3673_v42 }
  0xc8   : > { %2861 = vmatpush3.bf16.msra.mxu1 %v3180_v11  ;;  %2665 = vmatprep.mubr.msk.bf16.mxu1 %vm2664_vm10, %v3434_v47  ;;  %v263_v13 = vpop.permute.xlu1 %262  ;;  %vm480_vm10 = vcmp.eq.s32.totalorder %v3710_v2, %v3673_v42 }
  0xc9   : > { %2862 = vmatprep.subr.bf16.mxu1 %v3181_v3  ;;  %vm309_vm1 = vcmp.eq.s32.totalorder %v263_v13, %v3669_v39  ;;  %vm310_vm5 = vcmp.eq.s32.totalorder %v263_v13, %v3673_v42  ;;  %vm2672_vm14 = vmpackc.low %vm480_vm10, %vm478_vm9 }
  0xca   : > { %3147 = vset.pattern.permute.xlu1 %v3433_v37 }
  0xcb   : > { %778 = vperm.xlu1 %3147, %v3562_v6   ;;  %v3184_v6 = vld [vmem:[#allocation2 + $0x138] sm:$0xff]  }
  0xcc   : > { %2863 = vmatpush3.bf16.msra.mxu1 %v3182_v14  ;;  %v266_v16 = vpop.permute.xlu0 %265 }
  0xcd   : > { %vm311_vm2 = vcmp.eq.s32.totalorder %v266_v16, %v3669_v39  ;;  %v3742_v18 = vpop.permute.xlu1 %446  ;;  %vm312_vm3 = vcmp.eq.s32.totalorder %v266_v16, %v3673_v42  ;;  %2976 = vmatprep.subr.bf16.mxu1 %v3185_v15 }
  0xce   : > { %vm2634_vm4 = vmpackc.low %vm311_vm2, %vm309_vm1 }
  0xcf   : > { %781 = vperm.xlu1 %3147, %v3557_v5   ;;  %2667 = vmatmul.mubr.msk.bf16.vlgmr.msra.gmra.mxu1 %vm2666_vm15, %v3434_v47  ;;  %vm2632_vm6 = vmpackc.low %vm312_vm3, %vm310_vm5  ;;  %v3197_v5 = vld [vmem:[#allocation2 + $0x1e8] sm:$0xff]   ;;  %vm477_vm3 = vcmp.eq.s32.totalorder %v3707_v1, %v3669_v39  ;;  %vm482_vm5 = vcmp.eq.s32.totalorder %v3716_v8, %v3673_v42 }
  0xd0   : > { %2633 = vmatprep.mubr.msk.bf16.mxu0 %vm2632_vm6, %v3434_v47  ;;  %2669 = vmatprep.mubr.msk.bf16.mxu1 %vm3736_vm0, %v3434_v47  ;;  %v269_v24 = vpop.permute.xlu0 %268  ;;  %vm484_vm6 = vcmp.eq.s32.totalorder %v3718_v10, %v3673_v42 }
  0xd1   : > { %2635 = vmatmul.mubr.msk.bf16.vlgmr.msra.gmra.mxu0 %vm2634_vm4, %v3434_v47  ;;  %v3753_v22 = vpop.permute.xlu1 %449  ;;  %2977 = vmatpush3.bf16.msra.mxu1 %v3186_v19  ;;  %vm314_vm11 = vcmp.eq.s32.totalorder %v269_v24, %v3673_v42  ;;  %vm313_vm13 = vcmp.eq.s32.totalorder %v269_v24, %v3669_v39  ;;  %vm479_vm4 = vcmp.eq.s32.totalorder %v3710_v2, %v3669_v39  ;;  %vm2676_vm8 = vmpackc.low %vm484_vm6, %vm482_vm5 }
  0xd2   : > { %2913 = vmatpush3.bf16.msra.mxu0 %v3184_v6  ;;  %2978 = vmatprep.subr.bf16.mxu1 %v3191_v20  ;;  %vm2674_vm7 = vmpackc.low %vm479_vm4, %vm477_vm3  ;;  %vm486_vm3 = vcmp.eq.s32.totalorder %v3742_v18, %v3673_v42  ;;  %vm487_vm5 = vcmp.eq.s32.totalorder %v3753_v22, %v3669_v39  ;;  %vm490_vm6 = vcmp.eq.s32.totalorder %v3725_v12, %v3673_v42  ;;  %v3215_v20 = vld [vmem:[%s4530_s3 + $0x70] ss:$8 sps:$4 sm:$0xff]  }
  0xd3   : > { %3148 = vset.pattern.permute.xlu1 %v3432_v36  ;;  %2914 = vmatprep.subr.bf16.mxu0 %v3187_v21  ;;  %v3207_v36 = vld [vmem:[#allocation2 + $0x1d8] sm:$0xff]  }
  0xd4   : > { %627 = vperm.xlu1 %3148, %v3565_v9   ;;  %v3217_v21 = vld [vmem:[%s4530_s3 + $0x74] ss:$8 sps:$4 sm:$0xff]  }
  0xd5   : > { %2979 = vmatpush3.bf16.msra.mxu1 %v3192_v23 }
  0xd6   : > { %v272_v27 = vpop.permute.xlu1 %271  ;;  %2915 = vmatpush3.bf16.msra.mxu0 %v3188_v25  ;;  %2980 = vmatprep.subr.bf16.mxu1 %v3197_v5  ;;  %v3218_v5 = vld [vmem:[%s4530_s3 + $0x60] ss:$8 sps:$4 sm:$0xff]  }
  0xd7   : > { %vm315_vm15 = vcmp.eq.s32.totalorder %v272_v27, %v3669_v39  ;;  %vm316_vm0 = vcmp.eq.s32.totalorder %v272_v27, %v3673_v42  ;;  %2671 = vmatmul.mubr.msk.bf16.gmra.mxu1 %vm2670_vm12, %v3434_v47  ;;  %2916 = vmatprep.subr.bf16.mxu0 %v3189_v26  ;;  %v3220_v26 = vld [vmem:[%s4530_s3 + $0x64] ss:$8 sps:$4 sm:$0xff]  }
  0xd8   : > { %vm2636_vm1 = vmpackc.low %vm316_vm0, %vm314_vm11  ;;  %3150 = vset.pattern.permute.xlu1 %v3433_v37  ;;  %2673 = vmatprep.mubr.msk.bf16.mxu1 %vm2672_vm14, %v3434_v47  ;;  %v3208_v37 = vld [vmem:[#allocation2 + $0x198] sm:$0xff]   ;;  %vm481_vm14 = vcmp.eq.s32.totalorder %v3716_v8, %v3669_v39 }
  0xd9   : > { %vm2638_vm2 = vmpackc.low %vm315_vm15, %vm313_vm13  ;;  %787 = vperm.xlu1 %3150, %v3565_v9   ;;  %2637 = vmatprep.mubr.msk.bf16.mxu0 %vm2636_vm1, %v3434_v47  ;;  %v278_v9 = vpop.permute.xlu0 %277  ;;  %vm483_vm15 = vcmp.eq.s32.totalorder %v3718_v10, %v3669_v39  ;;  %vm488_vm1 = vcmp.eq.s32.totalorder %v3753_v22, %v3673_v42 }
  0xda   : > { %2639 = vmatmul.mubr.msk.bf16.gmra.mxu0 %vm2638_vm2, %v3434_v47  ;;  %2981 = vmatpush3.bf16.msra.mxu1 %v3198_v28  ;;  %vm320_vm9 = vcmp.eq.s32.totalorder %v278_v9, %v3673_v42  ;;  %vm319_vm10 = vcmp.eq.s32.totalorder %v278_v9, %v3669_v39  ;;  %vm2678_vm2 = vmpackc.low %vm483_vm15, %vm481_vm14 }
  0xdb   : > { %v3783_v33 = vpop.permute.xlu1 %455  ;;  %2917 = vmatpush3.bf16.msra.mxu0 %v3190_v29  ;;  %2982 = vmatprep.subr.bf16.mxu1 %v3203_v30  ;;  %vm2680_vm4 = vmpackc.low %vm488_vm1, %vm486_vm3  ;;  %vm489_vm1 = vcmp.eq.s32.totalorder %v3725_v12, %v3669_v39  ;;  %v3221_v29 = vld [vmem:[%s4530_s3 + $0x50] ss:$8 sps:$4 sm:$0xff]   ;;  %v3223_v30 = vld [vmem:[%s4530_s3 + $0x54] ss:$8 sps:$4 sm:$0xff]  }
  0xdc   : > { %2918 = vmatprep.subr.bf16.mxu0 %v3193_v31 }
  0xdd   : > { %v281_v54 = vpop.permute.xlu0 %280 }
  0xde   : > { %2983 = vmatpush3.bf16.msra.mxu1 %v3204_v32 }
  0xdf   : > { %2675 = vmatmul.mubr.msk.bf16.gmra.mxu1 %vm2674_vm7, %v3434_v47  ;;  %2919 = vmatpush3.bf16.msra.mxu0 %v3194_v34  ;;  %vm492_vm7 = vcmp.eq.s32.totalorder %v3783_v33, %v3673_v42  ;;  %v3226_v34 = vld [vmem:[%s4530_s3 + $0x44] ss:$8 sps:$4 sm:$0xff]  }
  0xe0   : > { %2677 = vmatprep.mubr.msk.bf16.mxu1 %vm2676_vm8, %v3434_v47  ;;  %v275_v41 = vpop.permute.xlu1 %274  ;;  %2920 = vmatprep.subr.bf16.mxu0 %v3195_v35  ;;  %vm485_vm8 = vcmp.eq.s32.totalorder %v3742_v18, %v3669_v39 }
  0xe1   : > { %vm317_vm11 = vcmp.eq.s32.totalorder %v275_v41, %v3669_v39  ;;  %vm318_vm12 = vcmp.eq.s32.totalorder %v275_v41, %v3673_v42  ;;  %2984 = vmatprep.subr.bf16.mxu1 %v3207_v36  ;;  %v465_v60 = vpop.permute.xlu0 %464  ;;  %v3229_v36 = vld [vmem:[%s4530_s3 + $0x34] ss:$8 sps:$4 sm:$0xff]  }
  0xe2   : > { %vm2640_vm13 = vmpackc.low %vm320_vm9, %vm318_vm12  ;;  %2985 = vmatpush3.bf16.msra.mxu1 %v3208_v37  ;;  %vm322_vm9 = vcmp.eq.s32.totalorder %v281_v54, %v3673_v42 }
  0xe3   : > { %vm2642_vm0 = vmpackc.low %vm319_vm10, %vm317_vm11  ;;  %2641 = vmatprep.mubr.msk.bf16.mxu0 %vm2640_vm13, %v3434_v47  ;;  %2921 = vmatpush3.bf16.msra.mxu0 %v3196_v40  ;;  %vm321_vm11 = vcmp.eq.s32.totalorder %v281_v54, %v3669_v39  ;;  %v3227_v40 = vld [vmem:[%s4530_s3 + $0x30] ss:$8 sps:$4 sm:$0xff]  }
  0xe4   : > { %2643 = vmatmul.mubr.msk.bf16.gmra.mxu0 %vm2642_vm0, %v3434_v47  ;;  %2922 = vmatprep.subr.bf16.mxu0 %v3199_v43  ;;  %vm2682_vm10 = vmpackc.low %vm487_vm5, %vm485_vm8  ;;  %v3232_v43 = vld [vmem:[%s4530_s3 + $0x24] ss:$8 sps:$4 sm:$0xff]  }
  0xe5   : > { %v3803_v49 = vpop.permute.xlu1 %458  ;;  %2986 = vmatprep.subr.bf16.mxu1 %v3209_v44  ;;  %vm2684_vm12 = vmpackc.low %vm492_vm7, %vm490_vm6  ;;  %v586_v62 = vpop.permute.xlu0 %585  ;;  %v3230_v44 = vld [vmem:[%s4530_s3 + $0x20] ss:$8 sps:$4 sm:$0xff]  }
  0xe6   : > { %2987 = vmatpush3.bf16.msra.mxu1 %v3210_v45  ;;  %vm494_vm5 = vcmp.eq.s32.totalorder %v3803_v49, %v3673_v42  ;;  %vm632_vm7 = vcmp.eq.s32.totalorder %v586_v62, %v3673_v42  ;;  %vm631_vm8 = vcmp.eq.s32.totalorder %v586_v62, %v3669_v39 }
  0xe7   : > { %2679 = vmatmul.mubr.msk.bf16.gmra.mxu1 %vm2678_vm2, %v3434_v47  ;;  %2923 = vmatpush3.bf16.msra.mxu0 %v3200_v46  ;;  %vm491_vm2 = vcmp.eq.s32.totalorder %v3783_v33, %v3669_v39  ;;  %v3224_v33 = vld [vmem:[%s4530_s3 + $0x40] ss:$8 sps:$4 sm:$0xff]   ;;  %v3235_v46 = vld [vmem:[%s4530_s3 + $0x14] ss:$8 sps:$4 sm:$0xff]  }
  0xe8   : > { %2681 = vmatprep.mubr.msk.bf16.mxu1 %vm2680_vm4, %v3434_v47  ;;  %2924 = vmatprep.subr.bf16.mxu0 %v3201_v48  ;;  %vm2686_vm4 = vmpackc.low %vm491_vm2, %vm489_vm1  ;;  %v3233_v48 = vld [vmem:[%s4530_s3 + $0x10] ss:$8 sps:$4 sm:$0xff]  }
  0xe9   : > { %v462_v56 = vpop.permute.xlu1 %461  ;;  %2988 = vmatprep.subr.bf16.mxu1 %v3211_v50  ;;  %v589_v1 = vpop.permute.xlu0 %588 }
  0xea   : > { %2989 = vmatpush3.bf16.msra.mxu1 %v3212_v51  ;;  %vm496_vm3 = vcmp.eq.s32.totalorder %v462_v56, %v3673_v42 }
  0xeb   : > { %2925 = vmatpush3.bf16.msra.mxu0 %v3202_v52  ;;  %2990 = vmatprep.subr.bf16.mxu1 %v3213_v53  ;;  %vm2688_vm6 = vmpackc.low %vm496_vm3, %vm494_vm5 }
  0xec   : > { %2926 = vmatprep.subr.bf16.mxu0 %v3205_v55 }
  0xed   : > { %v598_v7 = vpop.permute.xlu0 %597 }
  0xee   : > { %v284_v59 = vpop.permute.xlu1 %283  ;;  %2991 = vmatpush3.bf16.msra.mxu1 %v3214_v57 }
  0xef   : > { %vm323_vm13 = vcmp.eq.s32.totalorder %v284_v59, %v3669_v39  ;;  %vm324_vm14 = vcmp.eq.s32.totalorder %v284_v59, %v3673_v42  ;;  %2683 = vmatmul.mubr.msk.bf16.gmra.mxu1 %vm2682_vm10, %v3434_v47  ;;  %2927 = vmatpush3.bf16.msra.mxu0 %v3206_v58 }
  0xf0   : > { %vm2644_vm15 = vmpackc.low %vm324_vm14, %vm322_vm9  ;;  %2685 = vmatprep.mubr.msk.bf16.mxu1 %vm2684_vm12, %v3434_v47  ;;  %vm495_vm12 = vcmp.eq.s32.totalorder %v462_v56, %v3669_v39  ;;  %1940 = vmatprep.subr.bf16.mxu0 %v3217_v21 }
  0xf1   : > { %vm2646_vm0 = vmpackc.low %vm323_vm13, %vm321_vm11  ;;  %2645 = vmatprep.mubr.msk.bf16.mxu0 %vm2644_vm15, %v3434_v47  ;;  %vm498_vm15 = vcmp.eq.s32.totalorder %v465_v60, %v3673_v42  ;;  %v749_v10 = vpop.permute.xlu0 %748 }
  0xf2   : > { %2647 = vmatmul.mubr.msk.bf16.gmra.mxu0 %vm2646_vm0, %v3434_v47  ;;  %vm493_vm0 = vcmp.eq.s32.totalorder %v3803_v49, %v3669_v39 }
  0xf3   : > { %v468_v61 = vpop.permute.xlu1 %467  ;;  %vm2690_vm1 = vmpackc.low %vm495_vm12, %vm493_vm0 }
  0xf4   : > { %vm500_vm14 = vcmp.eq.s32.totalorder %v468_v61, %v3673_v42  ;;  %vm499_vm3 = vcmp.eq.s32.totalorder %v468_v61, %v3669_v39 }
  0xf5   : > { %vm2692_vm2 = vmpackc.low %vm500_vm14, %vm498_vm15  ;;  %vm794_vm15 = vcmp.eq.s32.totalorder %v749_v10, %v3673_v42  ;;  %v761_v12 = vpop.permute.xlu0 %760 }
  0xf7   : > { %2687 = vmatmul.mubr.msk.bf16.gmra.mxu1 %vm2686_vm4, %v3434_v47  ;;  %vm497_vm4 = vcmp.eq.s32.totalorder %v465_v60, %v3669_v39 }
  0xf8   : > { %2689 = vmatprep.mubr.msk.bf16.mxu1 %vm2688_vm6, %v3434_v47  ;;  %v583_v63 = vpop.permute.xlu1 %582  ;;  %vm634_vm6 = vcmp.eq.s32.totalorder %v589_v1, %v3673_v42 }
  0xf9   : > { %vm629_vm9 = vcmp.eq.s32.totalorder %v583_v63, %v3669_v39  ;;  %vm630_vm10 = vcmp.eq.s32.totalorder %v583_v63, %v3673_v42  ;;  %v601_v15 = vpop.permute.xlu0 %600 }
  0xfa   : > { %vm2696_vm11 = vmpackc.low %vm632_vm7, %vm630_vm10 }
  0xfb   : > { %vm2698_vm13 = vmpackc.low %vm631_vm8, %vm629_vm9  ;;  %2697 = vmatprep.mubr.msk.bf16.mxu0 %vm2696_vm11, %v3434_v47  ;;  %vm633_vm9 = vcmp.eq.s32.totalorder %v589_v1, %v3669_v39 }
  0xfc   : > { %2699 = vmatmul.mubr.msk.bf16.vlgmr.msra.gmra.mxu0 %vm2698_vm13, %v3434_v47  ;;  %vm2694_vm7 = vmpackc.low %vm499_vm3, %vm497_vm4 }
  0xfd   : > { %v743_v2 = vpop.permute.xlu1 %742  ;;  %v610_v18 = vpop.permute.xlu0 %609  ;;  %1941 = vmatpush1.bf16.msra.mxu0 %v3215_v20 }
  0xfe   : > { %vm790_vm8 = vcmp.eq.s32.totalorder %v743_v2, %v3673_v42  ;;  %1942 = vmatprep.subr.bf16.mxu0 %v3220_v26 }
  0xff   : > { %2691 = vmatmul.mubr.msk.bf16.gmra.mxu1 %vm2690_vm1, %v3434_v47 }
 0x100   : > { %2693 = vmatprep.mubr.msk.bf16.mxu1 %vm2692_vm2, %v3434_v47  ;;  %vm789_vm2 = vcmp.eq.s32.totalorder %v743_v2, %v3669_v39 }
 0x101   : > { %v746_v4 = vpop.permute.xlu1 %745  ;;  %v613_v23 = vpop.permute.xlu0 %612  ;;  %1943 = vmatpush1.bf16.msra.mxu0 %v3218_v5 }
 0x102   : > { %vm792_vm5 = vcmp.eq.s32.totalorder %v746_v4, %v3673_v42  ;;  %vm791_vm0 = vcmp.eq.s32.totalorder %v746_v4, %v3669_v39  ;;  %1944 = vmatprep.subr.bf16.mxu0 %v3223_v30 }
 0x103   : > { %vm2728_vm10 = vmpackc.low %vm792_vm5, %vm790_vm8  ;;  %vm640_vm5 = vcmp.eq.s32.totalorder %v598_v7, %v3673_v42 }
 0x104   : > { %vm2730_vm4 = vmpackc.low %vm791_vm0, %vm789_vm2 }
 0x105   : > { %v773_v25 = vpop.permute.xlu0 %772  ;;  %1945 = vmatpush1.bf16.msra.mxu0 %v3221_v29 }
 0x106   : > { %v592_v8 = vpop.permute.xlu1 %591  ;;  %1946 = vmatprep.subr.bf16.mxu0 %v3226_v34 }
 0x107   : > { %vm635_vm11 = vcmp.eq.s32.totalorder %v592_v8, %v3669_v39  ;;  %vm636_vm12 = vcmp.eq.s32.totalorder %v592_v8, %v3673_v42  ;;  %2695 = vmatmul.mubr.msk.bf16.gmra.mxu1 %vm2694_vm7, %v3434_v47 }
 0x108   : > { %vm2700_vm13 = vmpackc.low %vm636_vm12, %vm634_vm6  ;;  %2729 = vmatprep.mubr.msk.bf16.mxu1 %vm2728_vm10, %v3434_v47  ;;  %vm639_vm6 = vcmp.eq.s32.totalorder %v598_v7, %v3669_v39 }
 0x109   : > { %vm2702_vm14 = vmpackc.low %vm635_vm11, %vm633_vm9  ;;  %2701 = vmatprep.mubr.msk.bf16.mxu0 %vm2700_vm13, %v3434_v47  ;;  %vm793_vm11 = vcmp.eq.s32.totalorder %v749_v10, %v3669_v39  ;;  %1947 = vmatpush1.bf16.msra.mxu0 %v3224_v33 }
 0x10a   : > { %2703 = vmatmul.mubr.msk.bf16.gmra.mxu0 %vm2702_vm14, %v3434_v47  ;;  %v622_v28 = vpop.permute.xlu0 %621  ;;  %1948 = vmatprep.subr.bf16.mxu0 %v3229_v36 }
 0x10b   : > { %v752_v11 = vpop.permute.xlu1 %751 }
 0x10c   : > { %vm796_vm1 = vcmp.eq.s32.totalorder %v752_v11, %v3673_v42  ;;  %vm795_vm10 = vcmp.eq.s32.totalorder %v752_v11, %v3669_v39 }
 0x10d   : > { %vm2732_vm3 = vmpackc.low %vm796_vm1, %vm794_vm15  ;;  %1949 = vmatpush1.bf16.msra.mxu0 %v3227_v40 }
 0x10e   : > { %vm2734_vm13 = vmpackc.low %vm795_vm10, %vm793_vm11  ;;  %vm802_vm10 = vcmp.eq.s32.totalorder %v761_v12, %v3673_v42  ;;  %vm801_vm11 = vcmp.eq.s32.totalorder %v761_v12, %v3669_v39  ;;  %v625_v35 = vpop.permute.xlu0 %624  ;;  %1950 = vmatprep.subr.bf16.mxu0 %v3232_v43 }
 0x10f   : > { %2731 = vmatmul.mubr.msk.bf16.vlgmr.msra.gmra.mxu1 %vm2730_vm4, %v3434_v47 }
 0x110   : > { %2733 = vmatprep.mubr.msk.bf16.mxu1 %vm2732_vm3, %v3434_v47  ;;  %v595_v3 = vpop.permute.xlu1 %594  ;;  %vm642_vm3 = vcmp.eq.s32.totalorder %v601_v15, %v3673_v42 }
 0x111   : > { %vm637_vm7 = vcmp.eq.s32.totalorder %v595_v3, %v3669_v39  ;;  %vm638_vm8 = vcmp.eq.s32.totalorder %v595_v3, %v3673_v42  ;;  %1951 = vmatpush1.bf16.msra.mxu0 %v3230_v44 }
 0x112   : > { %vm2704_vm9 = vmpackc.low %vm640_vm5, %vm638_vm8  ;;  %vm641_vm5 = vcmp.eq.s32.totalorder %v601_v15, %v3669_v39  ;;  %1952 = vmatprep.subr.bf16.mxu0 %v3235_v46 }
 0x113   : > { %vm2706_vm12 = vmpackc.low %vm639_vm6, %vm637_vm7  ;;  %2705 = vmatprep.mubr.msk.bf16.mxu0 %vm2704_vm9, %v3434_v47  ;;  %v785_v41 = vpop.permute.xlu0 %784 }
 0x114   : > { %2707 = vmatmul.mubr.msk.bf16.gmra.mxu0 %vm2706_vm12, %v3434_v47 }
 0x115   : > { %v755_v13 = vpop.permute.xlu1 %754  ;;  %1953 = vmatpush1.bf16.msra.mxu0 %v3233_v48 }
 0x116   : > { %vm798_vm14 = vcmp.eq.s32.totalorder %v755_v13, %v3673_v42  ;;  %vm797_vm2 = vcmp.eq.s32.totalorder %v755_v13, %v3669_v39 }
 0x117   : > { %2735 = vmatmul.mubr.msk.bf16.gmra.mxu1 %vm2734_vm13, %v3434_v47 }
 0x119   : > { %v758_v14 = vpop.permute.xlu1 %757 }
 0x11a   : > { %vm800_vm15 = vcmp.eq.s32.totalorder %v758_v14, %v3673_v42  ;;  %vm799_vm0 = vcmp.eq.s32.totalorder %v758_v14, %v3669_v39 }
 0x11b   : > { %vm2736_vm1 = vmpackc.low %vm800_vm15, %vm798_vm14 }
 0x11c   : > { %2737 = vmatprep.mubr.msk.bf16.mxu1 %vm2736_vm1, %v3434_v47  ;;  %vm2738_vm4 = vmpackc.low %vm799_vm0, %vm797_vm2  ;;  %vm648_vm0 = vcmp.eq.s32.totalorder %v610_v18, %v3673_v42  ;;  %vm647_vm1 = vcmp.eq.s32.totalorder %v610_v18, %v3669_v39 }
 0x11e   : > { %v604_v16 = vpop.permute.xlu1 %603 }
 0x11f   : > { %vm643_vm6 = vcmp.eq.s32.totalorder %v604_v16, %v3669_v39  ;;  %vm644_vm7 = vcmp.eq.s32.totalorder %v604_v16, %v3673_v42  ;;  %2739 = vmatmul.mubr.msk.bf16.gmra.mxu1 %vm2738_vm4, %v3434_v47 }
 0x120   : > { %vm2708_vm8 = vmpackc.low %vm644_vm7, %vm642_vm3 }
 0x121   : > { %vm2710_vm9 = vmpackc.low %vm643_vm6, %vm641_vm5  ;;  %2709 = vmatprep.mubr.msk.bf16.mxu0 %vm2708_vm8, %v3434_v47 }
 0x122   : > { %2711 = vmatmul.mubr.msk.bf16.gmra.mxu0 %vm2710_vm9, %v3434_v47 }
 0x123   : > { %v764_v17 = vpop.permute.xlu1 %763 }
 0x124   : > { %vm803_vm12 = vcmp.eq.s32.totalorder %v764_v17, %v3669_v39  ;;  %vm804_vm13 = vcmp.eq.s32.totalorder %v764_v17, %v3673_v42 }
 0x125   : > { %vm2740_vm14 = vmpackc.low %vm804_vm13, %vm802_vm10 }
 0x126   : > { %vm2742_vm15 = vmpackc.low %vm803_vm12, %vm801_vm11  ;;  %2741 = vmatprep.mubr.msk.bf16.mxu1 %vm2740_vm14, %v3434_v47  ;;  %vm650_vm12 = vcmp.eq.s32.totalorder %v613_v23, %v3673_v42 }
 0x127   : > { %2743 = vmatmul.mubr.msk.bf16.gmra.mxu1 %vm2742_vm15, %v3434_v47  ;;  %vm649_vm15 = vcmp.eq.s32.totalorder %v613_v23, %v3669_v39 }
 0x128   : > { %v607_v19 = vpop.permute.xlu1 %606 }
 0x129   : > { %vm645_vm2 = vcmp.eq.s32.totalorder %v607_v19, %v3669_v39  ;;  %vm646_vm3 = vcmp.eq.s32.totalorder %v607_v19, %v3673_v42 }
 0x12a   : > { %vm2712_vm4 = vmpackc.low %vm648_vm0, %vm646_vm3  ;;  %vm809_vm3 = vcmp.eq.s32.totalorder %v773_v25, %v3669_v39 }
 0x12b   : > { %vm2714_vm5 = vmpackc.low %vm647_vm1, %vm645_vm2  ;;  %2713 = vmatprep.mubr.msk.bf16.mxu0 %vm2712_vm4, %v3434_v47  ;;  %vm810_vm2 = vcmp.eq.s32.totalorder %v773_v25, %v3673_v42 }
 0x12c   : > { %2715 = vmatmul.mubr.msk.bf16.gmra.mxu0 %vm2714_vm5, %v3434_v47 }
 0x12d   : > { %v767_v6 = vpop.permute.xlu1 %766 }
 0x12e   : > { %vm806_vm6 = vcmp.eq.s32.totalorder %v767_v6, %v3673_v42  ;;  %vm805_vm9 = vcmp.eq.s32.totalorder %v767_v6, %v3669_v39 }
 0x131   : > { %v770_v22 = vpop.permute.xlu1 %769 }
 0x132   : > { %vm807_vm7 = vcmp.eq.s32.totalorder %v770_v22, %v3669_v39  ;;  %vm808_vm8 = vcmp.eq.s32.totalorder %v770_v22, %v3673_v42 }
 0x133   : > { %vm2744_vm10 = vmpackc.low %vm808_vm8, %vm806_vm6  ;;  %vm656_vm8 = vcmp.eq.s32.totalorder %v622_v28, %v3673_v42 }
 0x134   : > { %vm2746_vm11 = vmpackc.low %vm807_vm7, %vm805_vm9  ;;  %2745 = vmatprep.mubr.msk.bf16.mxu1 %vm2744_vm10, %v3434_v47  ;;  %vm655_vm9 = vcmp.eq.s32.totalorder %v622_v28, %v3669_v39 }
 0x135   : > { %2747 = vmatmul.mubr.msk.bf16.gmra.mxu1 %vm2746_vm11, %v3434_v47 }
 0x136   : > { %v616_v24 = vpop.permute.xlu1 %615 }
 0x137   : > { %vm651_vm13 = vcmp.eq.s32.totalorder %v616_v24, %v3669_v39  ;;  %vm652_vm14 = vcmp.eq.s32.totalorder %v616_v24, %v3673_v42 }
 0x138   : > { %vm2716_vm0 = vmpackc.low %vm652_vm14, %vm650_vm12 }
 0x139   : > { %vm2718_vm1 = vmpackc.low %vm651_vm13, %vm649_vm15  ;;  %2717 = vmatprep.mubr.msk.bf16.mxu0 %vm2716_vm0, %v3434_v47 }
 0x13a   : > { %2719 = vmatmul.mubr.msk.bf16.gmra.mxu0 %vm2718_vm1, %v3434_v47 }
 0x13c   : > { %v776_v27 = vpop.permute.xlu1 %775 }
 0x13d   : > { %vm811_vm4 = vcmp.eq.s32.totalorder %v776_v27, %v3669_v39  ;;  %vm812_vm5 = vcmp.eq.s32.totalorder %v776_v27, %v3673_v42 }
 0x13e   : > { %vm2748_vm6 = vmpackc.low %vm812_vm5, %vm810_vm2 }
 0x13f   : > { %vm2750_vm7 = vmpackc.low %vm811_vm4, %vm809_vm3  ;;  %2749 = vmatprep.mubr.msk.bf16.mxu1 %vm2748_vm6, %v3434_v47  ;;  %vm658_vm4 = vcmp.eq.s32.totalorder %v625_v35, %v3673_v42 }
 0x140   : > { %2751 = vmatmul.mubr.msk.bf16.gmra.mxu1 %vm2750_vm7, %v3434_v47  ;;  %vm657_vm7 = vcmp.eq.s32.totalorder %v625_v35, %v3669_v39 }
 0x141   : > { %v619_v31 = vpop.permute.xlu1 %618 }
 0x142   : > { %vm653_vm10 = vcmp.eq.s32.totalorder %v619_v31, %v3669_v39  ;;  %vm654_vm11 = vcmp.eq.s32.totalorder %v619_v31, %v3673_v42 }
 0x143   : > { %vm2720_vm12 = vmpackc.low %vm656_vm8, %vm654_vm11  ;;  %vm817_vm11 = vcmp.eq.s32.totalorder %v785_v41, %v3669_v39 }
 0x144   : > { %vm2722_vm13 = vmpackc.low %vm655_vm9, %vm653_vm10  ;;  %2721 = vmatprep.mubr.msk.bf16.mxu0 %vm2720_vm12, %v3434_v47  ;;  %vm818_vm10 = vcmp.eq.s32.totalorder %v785_v41, %v3673_v42 }
 0x145   : > { %2723 = vmatmul.mubr.msk.bf16.gmra.mxu0 %vm2722_vm13, %v3434_v47 }
 0x146   : > { %v779_v32 = vpop.permute.xlu1 %778 }
 0x147   : > { %vm814_vm14 = vcmp.eq.s32.totalorder %v779_v32, %v3673_v42  ;;  %vm813_vm1 = vcmp.eq.s32.totalorder %v779_v32, %v3669_v39 }
 0x14a   : > { %v782_v9 = vpop.permute.xlu1 %781 }
 0x14b   : > { %vm815_vm15 = vcmp.eq.s32.totalorder %v782_v9, %v3669_v39  ;;  %vm816_vm0 = vcmp.eq.s32.totalorder %v782_v9, %v3673_v42 }
 0x14c   : > { %vm2752_vm2 = vmpackc.low %vm816_vm0, %vm814_vm14 }
 0x14d   : > { %vm2754_vm3 = vmpackc.low %vm815_vm15, %vm813_vm1  ;;  %2753 = vmatprep.mubr.msk.bf16.mxu1 %vm2752_vm2, %v3434_v47 }
 0x14e   : > { %2755 = vmatmul.mubr.msk.bf16.gmra.mxu1 %vm2754_vm3, %v3434_v47 }
 0x14f   : > { %v628_v37 = vpop.permute.xlu1 %627 }
 0x150   : > { %vm659_vm5 = vcmp.eq.s32.totalorder %v628_v37, %v3669_v39  ;;  %vm660_vm6 = vcmp.eq.s32.totalorder %v628_v37, %v3673_v42 }
 0x151   : > { %vm2724_vm8 = vmpackc.low %vm660_vm6, %vm658_vm4 }
 0x152   : > { %vm2726_vm9 = vmpackc.low %vm659_vm5, %vm657_vm7  ;;  %2725 = vmatprep.mubr.msk.bf16.mxu0 %vm2724_vm8, %v3434_v47 }
 0x153   : > { %2727 = vmatmul.mubr.msk.bf16.gmra.mxu0 %vm2726_vm9, %v3434_v47 }
 0x154   : > { %v788_v45 = vpop.permute.xlu1 %787  ;;  %1972 = vmatprep.mubr.bf16.mxu0 %v3430_v0 }
 0x155   : > { %vm819_vm12 = vcmp.eq.s32.totalorder %v788_v45, %v3669_v39  ;;  %vm820_vm13 = vcmp.eq.s32.totalorder %v788_v45, %v3673_v42  ;;  %v3238_v39 = vld [vmem:[%s4530_s3 + $0x4] ss:$8 sps:$4 sm:$0xff]   ;;  %v3236_v42 = vld [vmem:[%s4530_s3] ss:$8 sps:$4 sm:$0xff]  }
 0x156   : > { %vm2756_vm14 = vmpackc.low %vm820_vm13, %vm818_vm10  ;;  %1954 = vmatprep.subr.bf16.mxu0 %v3238_v39  ;;  %v4052_v45 = vld [vmem:[%s4529_s2] ss:$0 sm:$0xff] }
 0x157   : > { %vm2758_vm15 = vmpackc.low %vm819_vm12, %vm817_vm11  ;;  %2757 = vmatprep.mubr.msk.bf16.mxu1 %vm2756_vm14, %v3434_v47  ;;  %1955 = vmatpush1.bf16.msra.mxu0 %v3236_v42 }
 0x158   : > { %2759 = vmatmul.mubr.msk.bf16.gmra.mxu1 %vm2758_vm15, %v3434_v47 }
 0x16f   : > { %v2824_v49 = vpop.f32.mrf.mxu1 }
 0x171   : > { %v2825_v50 = vpop.f32.mrf.mxu1 }
 0x172   : > { %v2826_v51 = vadd.f32 %v2825_v50, %v2824_v49 }
 0x173   : > { %v2827_v52 = vpop.f32.mrf.mxu1 }
 0x174   : > { %v1487_v48 = vadd.f32 %v2826_v51, %v4052_v45 }
 0x175   : > { %v2828_v53 = vpop.f32.mrf.mxu1 }
 0x176   : > { %v2829_v54 = vadd.f32 %v2828_v53, %v2827_v52 }
 0x177   : > { %v2830_v55 = vpop.f32.mrf.mxu1 }
 0x179   : > { %v2831_v47 = vpop.f32.mrf.mxu1 }
 0x17a   : > { %v3989_v56 = vadd.f32 %v2831_v47, %v2830_v55  ;;  %v1490_v55 = vadd.f32 %v2829_v54, %v4052_v45 }
 0x17b   : > { %v2833_v57 = vpop.f32.mrf.mxu1 }
 0x17c   : > { %v1495_v51 = vadd.f32 %v3989_v56, %v4052_v45 }
 0x17d   : > { %v2834_v58 = vpop.f32.mrf.mxu1 }
 0x17e   : > { %v3991_v59 = vadd.f32 %v2834_v58, %v2833_v57 }
 0x17f   : > { %v2836_v60 = vpop.f32.mrf.mxu1 }
 0x180   : > { %v1498_v54 = vadd.f32 %v3991_v59, %v4052_v45 }
 0x181   : > { %v2837_v61 = vpop.f32.mrf.mxu1 }
 0x182   : > { %v3993_v62 = vadd.f32 %v2837_v61, %v2836_v60 }
 0x183   : > { %v2839_v63 = vpop.f32.mrf.mxu1 }
 0x184   : > { %v1503_v56 = vadd.f32 %v3993_v62, %v4052_v45 }
 0x185   : > { %v2840_v1 = vpop.f32.mrf.mxu1 }
 0x186   : > { %v3995_v2 = vadd.f32 %v2840_v1, %v2839_v63 }
 0x187   : > { %v2842_v4 = vpop.f32.mrf.mxu1 }
 0x189   : > { %v2843_v7 = vpop.f32.mrf.mxu1 }
 0x18a   : > { %v3997_v8 = vadd.f32 %v2843_v7, %v2842_v4 }
 0x18b   : > { %v2845_v10 = vpop.f32.mrf.mxu1 }
 0x18d   : > { %v2846_v11 = vpop.f32.mrf.mxu1 }
 0x18e   : > { %v3999_v3 = vadd.f32 %v2846_v11, %v2845_v10 }
 0x18f   : > { %v2864_v12 = vpop.f32.mrf.mxu1 }
 0x191   : > { %v4001_v13 = vpop.f32.mrf.mxu0  ;;  %v2865_v14 = vpop.f32.mrf.mxu1 }
 0x192   : > { %v4003_v15 = vadd.f32 %v2865_v14, %v2864_v12 }
 0x193   : > { %v4005_v16 = vpop.f32.mrf.mxu0  ;;  %v4007_v17 = vpop.f32.mrf.mxu1 }
 0x194   : > { %v2802_v62 = vadd.f32 %v4005_v16, %v4001_v13 }
 0x195   : > { %v4009_v18 = vpop.f32.mrf.mxu0  ;;  %v4011_v19 = vpop.f32.mrf.mxu1 }
 0x197   : > { %v2870_v6 = vpop.f32.mrf.mxu1  ;;  %v4013_v20 = vpop.f32.mrf.mxu0 }
 0x199   : > { %v2871_v21 = vpop.f32.mrf.mxu1 }
 0x19a   : > { %v4015_v22 = vadd.f32 %v2871_v21, %v2870_v6  ;;  %v4017_v23 = vpop.f32.mrf.mxu0 }
 0x19b   : > { %v4019_v24 = vpop.f32.mrf.mxu1 }
 0x19c   : > { %v4021_v25 = vpop.f32.mrf.mxu0 }
 0x19d   : > { %v4023_v5 = vpop.f32.mrf.mxu1 }
 0x19e   : > { %v4025_v26 = vpop.f32.mrf.mxu0 }
 0x19f   : > { %v2876_v27 = vpop.f32.mrf.mxu1 }
 0x1a0   : > { %v4027_v29 = vpop.f32.mrf.mxu0 }
 0x1a1   : > { %v2877_v28 = vpop.f32.mrf.mxu1 }
 0x1a2   : > { %v4029_v30 = vadd.f32 %v2877_v28, %v2876_v27 }
 0x1a3   : > { %v4031_v31 = vpop.f32.mrf.mxu1 }
 0x1a4   : > { %v4033_v32 = vpop.f32.mrf.mxu0 }
 0x1a5   : > { %v4035_v33 = vpop.f32.mrf.mxu1 }
 0x1a6   : > { %v4037_v9 = vpop.f32.mrf.mxu0 }
 0x1a7   : > { %v2882_v34 = vpop.f32.mrf.mxu1 }
 0x1a8   : > { %v4043_v40 = vpop.f32.mrf.mxu0 }
 0x1a9   : > { %v2883_v35 = vpop.f32.mrf.mxu1 }
 0x1aa   : > { %v4039_v36 = vadd.f32 %v2883_v35, %v2882_v34  ;;  %v4047_v44 = vpop.f32.mrf.mxu0 }
 0x1ab   : > { %v4041_v37 = vpop.f32.mrf.mxu1 }
 0x1ad   : > { %v4045_v41 = vpop.f32.mrf.mxu1 }
 0x1af   : > { %v2888_v43 = vpop.f32.mrf.mxu1 }
 0x1b1   : > { %v2889_v46 = vpop.f32.mrf.mxu1 }
 0x1b2   : > { %v2890_v39 = vadd.f32 %v2889_v46, %v2888_v43  ;;  %v4055_v42 = vpop.f32.mrf.mxu0 }
 0x1b3   : > { %v2891_v49 = vpop.f32.mrf.mxu1 }
 0x1b4   : > { %v4057_v50 = vadd.f32 %v2890_v39, %v1487_v48  ;;  %v4059_v52 = vpop.f32.mrf.mxu0  ;;  %v1506_v48 = vadd.f32 %v3995_v2, %v4052_v45 }
 0x1b5   : > { %v2892_v53 = vpop.f32.mrf.mxu1 }
 0x1b6   : > { %v2893_v47 = vadd.f32 %v2892_v53, %v2891_v49  ;;  %v4062_v57 = vpop.f32.mrf.mxu0 }
 0x1b7   : > { %v2894_v58 = vpop.f32.mrf.mxu1 }
 0x1b8   : > { %v4064_v60 = vadd.f32 %v2893_v47, %v1490_v55  ;;  %v4068_v63 = vpop.f32.mrf.mxu0  ;;  %v1511_v47 = vadd.f32 %v3997_v8, %v4052_v45 }
 0x1b9   : > { %v2895_v61 = vpop.f32.mrf.mxu1 }
 0x1ba   : > { %v2896_v1 = vadd.f32 %v2895_v61, %v2894_v58 }
 0x1bb   : > { %v2897_v4 = vpop.f32.mrf.mxu1 }
 0x1bc   : > { %v4070_v7 = vadd.f32 %v2896_v1, %v1495_v51  ;;  %v2928_v10 = vpop.f32.mrf.mxu0  ;;  %v2805_v1 = vadd.f32 %v4013_v20, %v4009_v18  ;;  %v2808_v18 = vadd.f32 %v4021_v25, %v4017_v23 }
 0x1bd   : > { %v2898_v11 = vpop.f32.mrf.mxu1 }
 0x1be   : > { %v2899_v12 = vadd.f32 %v2898_v11, %v2897_v4  ;;  %v2929_v21 = vpop.f32.mrf.mxu0  ;;  %v1458_v13 = vadd.f32 %v2805_v1, %v4052_v45 }
 0x1bf   : > { %v2900_v14 = vpop.f32.mrf.mxu1  ;;  %v2930_v16 = vadd.f32 %v2929_v21, %v2928_v10 }
 0x1c0   : > { %v4074_v6 = vadd.f32 %v2899_v12, %v1498_v54  ;;  %v2931_v43 = vpop.f32.mrf.mxu0  ;;  %v1514_v54 = vadd.f32 %v3999_v3, %v4052_v45  ;;  %v1455_v12 = vadd.f32 %v2802_v62, %v4052_v45 }
 0x1c1   : > { %v2901_v27 = vpop.f32.mrf.mxu1 }
 0x1c2   : > { %v2902_v28 = vadd.f32 %v2901_v27, %v2900_v14  ;;  %v2932_v49 = vpop.f32.mrf.mxu0 }
 0x1c3   : > { %v2903_v34 = vpop.f32.mrf.mxu1  ;;  %v2933_v3 = vadd.f32 %v2932_v49, %v2931_v43  ;;  %v2875_v49 = vadd.f32 %v4023_v5, %v4019_v24 }
 0x1c4   : > { %v4078_v35 = vadd.f32 %v2902_v28, %v1503_v56  ;;  %v2869_v28 = vadd.f32 %v4011_v19, %v4007_v17 }
 0x1c5   : > { %v2904_v46 = vpop.f32.mrf.mxu1 }
 0x1c6   : > { %v2905_v39 = vadd.f32 %v2904_v46, %v2903_v34  ;;  %v1552_v34 = vadd.f32 %v4003_v15, %v1455_v12  ;;  %v1555_v10 = vadd.f32 %v2869_v28, %v1458_v13 }
 0x1c7   : > { %v2906_v59 = vpop.f32.mrf.mxu1 }
 0x1c8   : > { %v4082_v53 = vadd.f32 %v2905_v39, %v1506_v48  ;;  %v1652_v23 = vadd.f32 %v2933_v3, %v1555_v10 }
 0x1c9   : > { %v2907_v55 = vpop.f32.mrf.mxu1 }
 0x1ca   : > { %v2908_v58 = vadd.f32 %v2907_v55, %v2906_v59  ;;  %v2934_v61 = vpop.f32.mrf.mxu0  ;;  %v2811_v59 = vadd.f32 %v4027_v29, %v4025_v26  ;;  %v1649_v55 = vadd.f32 %v2930_v16, %v1552_v34  ;;  %v2814_v26 = vadd.f32 %v4037_v9, %v4033_v32 }
 0x1cb   : > { %v2909_v51 = vpop.f32.mrf.mxu1  ;;  %v2817_v16 = vadd.f32 %v4047_v44, %v4043_v40  ;;  %v2881_v40 = vadd.f32 %v4035_v33, %v4031_v31  ;;  %v2820_v44 = vadd.f32 %v4059_v52, %v4055_v42 }
 0x1cc   : > { %v4090_v4 = vadd.f32 %v2908_v58, %v1511_v47  ;;  %v2935_v2 = vpop.f32.mrf.mxu0  ;;  %v1463_v47 = vadd.f32 %v2808_v18, %v4052_v45  ;;  %v1466_v15 = vadd.f32 %v2811_v59, %v4052_v45  ;;  %v1471_v24 = vadd.f32 %v2814_v26, %v4052_v45 }
 0x1cd   : > { %v2910_v11 = vpop.f32.mrf.mxu1  ;;  %v2936_v19 = vadd.f32 %v2935_v2, %v2934_v61  ;;  %v1474_v28 = vadd.f32 %v2817_v16, %v4052_v45  ;;  %v1479_v31 = vadd.f32 %v2820_v44, %v4052_v45 }
 0x1ce   : > { %v2911_v14 = vadd.f32 %v2910_v11, %v2909_v51  ;;  %v2937_v8 = vpop.f32.mrf.mxu0  ;;  %v1560_v29 = vadd.f32 %v4015_v22, %v1463_v47  ;;  %v1563_v2 = vadd.f32 %v2875_v49, %v1466_v15 }
 0x1cf   : > { %v2992_v27 = vpop.f32.mrf.mxu1  ;;  %v1576_v26 = vadd.f32 %v4039_v36, %v1479_v31 }
 0x1d0   : > { %v4096_v56 = vadd.f32 %v2911_v14, %v1514_v54  ;;  %v2938_v46 = vpop.f32.mrf.mxu0  ;;  %v1657_v61 = vadd.f32 %v2936_v19, %v1560_v29 }
 0x1d1   : > { %v2993_v20 = vpop.f32.mrf.mxu1  ;;  %v2939_v11 = vadd.f32 %v2938_v46, %v2937_v8  ;;  %v1568_v46 = vadd.f32 %v4029_v30, %v1471_v24 }
 0x1d2   : > { %v2994_v48 = vadd.f32 %v2993_v20, %v2992_v27 }
 0x1d3   : > { %v2995_v39 = vpop.f32.mrf.mxu1  ;;  %v1660_v20 = vadd.f32 %v2939_v11, %v1563_v2 }
 0x1d4   : > { %v2940_v21 = vpop.f32.mrf.mxu0  ;;  %v1746_v25 = vadd.f32 %v2994_v48, %v1649_v55 }
 0x1d5   : > { %v2996_v62 = vpop.f32.mrf.mxu1 }
 0x1d6   : > { %v2997_v58 = vadd.f32 %v2996_v62, %v2995_v39  ;;  %v2941_v51 = vpop.f32.mrf.mxu0  ;;  %v1808_v54 = vmax.f32 %v1746_v25, 0.0  ;;  %v1571_v25 = vadd.f32 %v2881_v40, %v1474_v28 }
 0x1d7   : > { %v2998_v17 = vpop.f32.mrf.mxu1  ;;  %v2942_v34 = vadd.f32 %v2941_v51, %v2940_v21 }
 0x1d8   : > { %v1749_v43 = vadd.f32 %v2997_v58, %v1652_v23  ;;  %v2943_v27 = vpop.f32.mrf.mxu0  ;;  %v2823_v23 = vadd.f32 %v4068_v63, %v4062_v57  ;;  %v2887_v63 = vadd.f32 %v4045_v41, %v4041_v37 }
 0x1d9   : > { %v2999_v1 = vpop.f32.mrf.mxu1  ;;  %v1665_v21 = vadd.f32 %v2942_v34, %v1568_v46 }
 0x1da   : > { %v1809_v12 = vmax.f32 %v1749_v43, 0.0  ;;  %v3000_v14 = vadd.f32 %v2999_v1, %v2998_v17  ;;  %v2944_v22 = vpop.f32.mrf.mxu0  ;;  %v1482_v19 = vadd.f32 %v2823_v23, %v4052_v45 }
 0x1db   : > { %v3001_v13 = vpop.f32.mrf.mxu1  ;;  %v2945_v59 = vadd.f32 %v2944_v22, %v2943_v27 }
 0x1dc   : > { %v1824_v18 = vpack.c.bf16 %v1809_v12, %v1808_v54  ;;  %v1754_v32 = vadd.f32 %v3000_v14, %v1657_v61 }
 0x1dd   : > { %v3002_v5 = vpop.f32.mrf.mxu1  ;;  %v1668_v42 = vadd.f32 %v2945_v59, %v1571_v25 }
 0x1de   : > { %v3003_v9 = vadd.f32 %v3002_v5, %v3001_v13  ;;  %1973 = vmatmul.mubr.bf16.vlgmr.msra.gmra.mxu0 %v1824_v18  ;;  %v1810_v39 = vmax.f32 %v1754_v32, 0.0  ;;  %v1579_v13 = vadd.f32 %v2887_v63, %v1482_v19 }
 0x1df   : > { %v3004_v8 = vpop.f32.mrf.mxu1  ;;  %1982 = vmatprep.mubr.bf16.mxu0 %v3430_v0 }
 0x1e0   : > { %v1757_v3 = vadd.f32 %v3003_v9, %v1660_v20 }
 0x1e1   : > { %v3005_v48 = vpop.f32.mrf.mxu1 }
 0x1e2   : > { %v1811_v55 = vmax.f32 %v1757_v3, 0.0  ;;  %v3006_v10 = vadd.f32 %v3005_v48, %v3004_v8  ;;  %v2946_v47 = vpop.f32.mrf.mxu0 }
 0x1e3   : > { %v3007_v62 = vpop.f32.mrf.mxu1 }
 0x1e4   : > { %v2947_v58 = vpop.f32.mrf.mxu0  ;;  %v1825_v51 = vpack.c.bf16 %v1811_v55, %v1810_v39  ;;  %v1762_v52 = vadd.f32 %v3006_v10, %v1665_v21 }
 0x1e5   : > { %v3008_v33 = vpop.f32.mrf.mxu1  ;;  %v2948_v43 = vadd.f32 %v2947_v58, %v2946_v47 }
 0x1e6   : > { %v3009_v30 = vadd.f32 %v3008_v33, %v3007_v62  ;;  %1983 = vmatmul.mubr.bf16.gmra.mxu0 %v1825_v51  ;;  %v2949_v17 = vpop.f32.mrf.mxu0  ;;  %v1812_v1 = vmax.f32 %v1762_v52, 0.0 }
 0x1e7   : > { %v3010_v15 = vpop.f32.mrf.mxu1  ;;  %1992 = vmatprep.mubr.bf16.mxu0 %v3430_v0  ;;  %v1673_v27 = vadd.f32 %v2948_v43, %v1576_v26 }
 0x1e8   : > { %v1765_v49 = vadd.f32 %v3009_v30, %v1668_v42  ;;  %v2950_v57 = vpop.f32.mrf.mxu0 }
 0x1e9   : > { %v3011_v29 = vpop.f32.mrf.mxu1  ;;  %v2951_v54 = vadd.f32 %v2950_v57, %v2949_v17 }
 0x1ea   : > { %v1813_v11 = vmax.f32 %v1765_v49, 0.0  ;;  %v3012_v12 = vadd.f32 %v3011_v29, %v3010_v15 }
 0x1eb   : > { %v3013_v14 = vpop.f32.mrf.mxu1  ;;  %v1676_v45 = vadd.f32 %v2951_v54, %v1579_v13 }
 0x1ec   : > { %v2952_v16 = vpop.f32.mrf.mxu0  ;;  %v1826_v61 = vpack.c.bf16 %v1813_v11, %v1812_v1  ;;  %v1770_v18 = vadd.f32 %v3012_v12, %v1673_v27 }
 0x1ed   : > { %v3014_v2 = vpop.f32.mrf.mxu1 }
 0x1ee   : > { %v3015_v24 = vadd.f32 %v3014_v2, %v3013_v14  ;;  %1993 = vmatmul.mubr.bf16.gmra.mxu0 %v1826_v61  ;;  %v2953_v5 = vpop.f32.mrf.mxu0  ;;  %v1814_v41 = vmax.f32 %v1770_v18, 0.0 }
 0x1ef   : > { %2002 = vmatprep.mubr.bf16.mxu0 %v3430_v0  ;;  %v2954_v8 = vadd.f32 %v2953_v5, %v2952_v16 }
 0x1f0   : > { %v1773_v37 = vadd.f32 %v3015_v24, %v1676_v45  ;;  %v2955_v36 = vpop.f32.mrf.mxu0 }
 0x1f1   : > { %v1681_v44 = vadd.f32 %v2954_v8, %v4057_v50 }
 0x1f2   : > { %v1815_v20 = vmax.f32 %v1773_v37, 0.0  ;;  %v2956_v9 = vpop.f32.mrf.mxu0 }
 0x1f3   : > { %v2957_v34 = vadd.f32 %v2956_v9, %v2955_v36 }
 0x1f4   : > { %v1827_v32 = vpack.c.bf16 %v1815_v20, %v1814_v41 }
 0x1f5   : > { %v3016_v22 = vpop.f32.mrf.mxu1  ;;  %v1684_v39 = vadd.f32 %v2957_v34, %v4064_v60 }
 0x1f6   : > { %2003 = vmatmul.mubr.bf16.gmra.mxu0 %v1827_v32 }
 0x1f7   : > { %v3017_v28 = vpop.f32.mrf.mxu1  ;;  %2012 = vmatprep.mubr.bf16.mxu0 %v3430_v0 }
 0x1f8   : > { %v3018_v3 = vadd.f32 %v3017_v28, %v3016_v22 }
 0x1f9   : > { %v3019_v40 = vpop.f32.mrf.mxu1 }
 0x1fa   : > { %v2958_v46 = vpop.f32.mrf.mxu0  ;;  %v1778_v59 = vadd.f32 %v3018_v3, %v1681_v44 }
 0x1fb   : > { %v3020_v48 = vpop.f32.mrf.mxu1 }
 0x1fc   : > { %v3021_v55 = vadd.f32 %v3020_v48, %v3019_v40  ;;  %v2959_v10 = vpop.f32.mrf.mxu0  ;;  %v1816_v23 = vmax.f32 %v1778_v59, 0.0 }
 0x1fd   : > { %v2960_v51 = vadd.f32 %v2959_v10, %v2958_v46  ;;  %v1851_v10 = vshrl.u32 %v258_v38, 7 }
 0x1fe   : > { %v1781_v47 = vadd.f32 %v3021_v55, %v1684_v39  ;;  %v2961_v62 = vpop.f32.mrf.mxu0 }
 0x1ff   : > { %v1689_v50 = vadd.f32 %v2960_v51, %v4070_v7 }
 0x200   : > { %v1817_v21 = vmax.f32 %v1781_v47, 0.0  ;;  %v3022_v25 = vpop.f32.mrf.mxu1  ;;  %v2962_v58 = vpop.f32.mrf.mxu0  ;;  %v1852_v47 = vsub.s32 0, %v1851_v10 }
 0x201   : > { %v2963_v42 = vadd.f32 %v2962_v58, %v2961_v62  ;;  %v1856_v62 = vsub.s32 1, %v1851_v10 }
 0x202   : > { %v3023_v31 = vpop.f32.mrf.mxu1  ;;  %v1828_v33 = vpack.c.bf16 %v1817_v21, %v1816_v23 }
 0x203   : > { %v3024_v52 = vadd.f32 %v3023_v31, %v3022_v25  ;;  %v1692_v15 = vadd.f32 %v2963_v42, %v4074_v6 }
 0x204   : > { %v3025_v30 = vpop.f32.mrf.mxu1  ;;  %2013 = vmatmul.mubr.bf16.gmra.mxu0 %v1828_v33 }
 0x205   : > { %v2964_v17 = vpop.f32.mrf.mxu0  ;;  %2022 = vmatprep.mubr.bf16.mxu0 %v3430_v0  ;;  %v1786_v19 = vadd.f32 %v3024_v52, %v1689_v50 }
 0x206   : > { %v3026_v60 = vpop.f32.mrf.mxu1 }
 0x207   : > { %v3027_v43 = vadd.f32 %v3026_v60, %v3025_v30  ;;  %v2965_v49 = vpop.f32.mrf.mxu0  ;;  %v1818_v26 = vmax.f32 %v1786_v19, 0.0 }
 0x208   : > { %v2966_v12 = vadd.f32 %v2965_v49, %v2964_v17 }
 0x209   : > { %v1789_v57 = vadd.f32 %v3027_v43, %v1692_v15  ;;  %v2967_v63 = vpop.f32.mrf.mxu0 }
 0x20a   : > { %v1697_v6 = vadd.f32 %v2966_v12, %v4078_v35 }
 0x20b   : > { %v1819_v29 = vmax.f32 %v1789_v57, 0.0  ;;  %v2968_v11 = vpop.f32.mrf.mxu0 }
 0x20c   : > { %v2969_v7 = vadd.f32 %v2968_v11, %v2967_v63 }
 0x20d   : > { %v1829_v1 = vpack.c.bf16 %v1819_v29, %v1818_v26 }
 0x20e   : > { %v3028_v54 = vpop.f32.mrf.mxu1  ;;  %v1700_v2 = vadd.f32 %v2969_v7, %v4082_v53 }
 0x20f   : > { %2023 = vmatmul.mubr.bf16.gmra.mxu0 %v1829_v1 }
 0x210   : > { %v3029_v14 = vpop.f32.mrf.mxu1  ;;  %2032 = vmatprep.mubr.bf16.mxu0 %v3430_v0 }
 0x211   : > { %v3030_v27 = vadd.f32 %v3029_v14, %v3028_v54 }
 0x212   : > { %v3031_v13 = vpop.f32.mrf.mxu1 }
 0x213   : > { %v2970_v16 = vpop.f32.mrf.mxu0  ;;  %v1794_v45 = vadd.f32 %v3030_v27, %v1697_v6 }
 0x214   : > { %v3032_v61 = vpop.f32.mrf.mxu1 }
 0x215   : > { %v3033_v18 = vadd.f32 %v3032_v61, %v3031_v13  ;;  %v2971_v24 = vpop.f32.mrf.mxu0  ;;  %v1820_v41 = vmax.f32 %v1794_v45, 0.0 }
 0x216   : > { %v2972_v32 = vadd.f32 %v2971_v24, %v2970_v16 }
 0x217   : > { %v1797_v5 = vadd.f32 %v3033_v18, %v1700_v2  ;;  %v2973_v37 = vpop.f32.mrf.mxu0 }
 0x218   : > { %v3034_v36 = vpop.f32.mrf.mxu1  ;;  %v1705_v35 = vadd.f32 %v2972_v32, %v4090_v4  ;;  %v1848_v4 = vld [vmem:[%s4531_s4] sm:$0x3] }
 0x219   : > { %v1821_v20 = vmax.f32 %v1797_v5, 0.0  ;;  %v2974_v9 = vpop.f32.mrf.mxu0  ;;  %v4147_v23 = vrot.slane %v1848_v4, %v1852_v47 }
 0x21a   : > { %v3035_v22 = vpop.f32.mrf.mxu1  ;;  %v2975_v8 = vadd.f32 %v2974_v9, %v2973_v37 }
 0x21b   : > { %v3036_v28 = vadd.f32 %v3035_v22, %v3034_v36  ;;  %v1830_v34 = vpack.c.bf16 %v1821_v20, %v1820_v41 }
 0x21c   : > { %v3037_v3 = vpop.f32.mrf.mxu1  ;;  %v1708_v53 = vadd.f32 %v2975_v8, %v4096_v56 }
 0x21d   : > { %2033 = vmatmul.mubr.bf16.gmra.mxu0 %v1830_v34  ;;  %v1802_v44 = vadd.f32 %v3036_v28, %v1705_v35 }
 0x21e   : > { %v3038_v40 = vpop.f32.mrf.mxu1  ;;  %2042 = vmatprep.mubr.bf16.mxu0 %v3430_v0  ;;  %v4149_v0 = vrot.slane %v1848_v4, %v1856_v62 }
 0x21f   : > { %v3039_v46 = vadd.f32 %v3038_v40, %v3037_v3  ;;  %v1822_v39 = vmax.f32 %v1802_v44, 0.0 }
 0x221   : > { %v1805_v48 = vadd.f32 %v3039_v46, %v1708_v53 }
 0x223   : > { %v1823_v59 = vmax.f32 %v1805_v48, 0.0 }
 0x225   : > { %v1831_v55 = vpack.c.bf16 %v1823_v59, %v1822_v39 }
 0x227   : > { %2043 = vmatmul.mubr.bf16.gmra.mxu0 %v1831_v55 }
 0x29e   : > { %v1974_v56 = vpop.f32.mrf.mxu0 }
 0x29f   : > { %v4152_v25 = vadd.f32 %v1974_v56, %v4147_v23 }
 0x2a0   : > { %v1976_v21 = vpop.f32.mrf.mxu0 }
 0x2a1   : > { %v4155_v58 = vadd.f32 %v1976_v21, %v4149_v0 }
 0x2a2   : > { %v1978_v51 = vpop.f32.mrf.mxu0 }
 0x2a3   : > { %v2053_v38 = vmax.f32 %v4152_v25, %v4155_v58  ;;  %v4160_v33 = vadd.f32 %v1978_v51, %v4147_v23 }
 0x2a4   : > { %v1980_v31 = vpop.f32.mrf.mxu0 }
 0x2a5   : > { %v4163_v42 = vadd.f32 %v1980_v31, %v4149_v0  ;;  %2054 = vmax.xlane.f32.xlu1 %v2053_v38 }
 0x2a6   : > { %v1984_v52 = vpop.f32.mrf.mxu0 }
 0x2a7   : > { %v2056_v30 = vmax.f32 %v4160_v33, %v4163_v42  ;;  %v4168_v17 = vadd.f32 %v1984_v52, %v4147_v23 }
 0x2a8   : > { %v1986_v50 = vpop.f32.mrf.mxu0 }
 0x2a9   : > { %v4171_v60 = vadd.f32 %v1986_v50, %v4149_v0  ;;  %2057 = vmax.xlane.f32.xlu0 %v2056_v30 }
 0x2aa   : > { %v1988_v15 = vpop.f32.mrf.mxu0 }
 0x2ab   : > { %v2059_v19 = vmax.f32 %v4168_v17, %v4171_v60  ;;  %v4176_v49 = vadd.f32 %v1988_v15, %v4147_v23 }
 0x2ac   : > { %v1990_v43 = vpop.f32.mrf.mxu0 }
 0x2ad   : > { %v4179_v57 = vadd.f32 %v1990_v43, %v4149_v0  ;;  %2060 = vmax.xlane.f32.xlu0 %v2059_v19 }
 0x2ae   : > { %v1994_v63 = vpop.f32.mrf.mxu0 }
 0x2af   : > { %v2062_v26 = vmax.f32 %v4176_v49, %v4179_v57  ;;  %v4184_v1 = vadd.f32 %v1994_v63, %v4147_v23 }
 0x2b0   : > { %v1996_v29 = vpop.f32.mrf.mxu0 }
 0x2b1   : > { %v4187_v11 = vadd.f32 %v1996_v29, %v4149_v0  ;;  %2063 = vmax.xlane.f32.xlu1 %v2062_v26 }
 0x2b2   : > { %v1998_v54 = vpop.f32.mrf.mxu0 }
 0x2b3   : > { %v2065_v12 = vmax.f32 %v4184_v1, %v4187_v11  ;;  %v4192_v7 = vadd.f32 %v1998_v54, %v4147_v23 }
 0x2b4   : > { %v2000_v14 = vpop.f32.mrf.mxu0 }
 0x2b5   : > { %v4195_v27 = vadd.f32 %v2000_v14, %v4149_v0  ;;  %2066 = vmax.xlane.f32.xlu0 %v2065_v12 }
 0x2b6   : > { %v2004_v13 = vpop.f32.mrf.mxu0 }
 0x2b7   : > { %v2068_v6 = vmax.f32 %v4192_v7, %v4195_v27  ;;  %v4200_v61 = vadd.f32 %v2004_v13, %v4147_v23 }
 0x2b8   : > { %v2006_v16 = vpop.f32.mrf.mxu0 }
 0x2b9   : > { %v4203_v2 = vadd.f32 %v2006_v16, %v4149_v0  ;;  %2069 = vmax.xlane.f32.xlu1 %v2068_v6 }
 0x2ba   : > { %v2008_v45 = vpop.f32.mrf.mxu0 }
 0x2bb   : > { %v2071_v18 = vmax.f32 %v4200_v61, %v4203_v2  ;;  %v4208_v5 = vadd.f32 %v2008_v45, %v4147_v23 }
 0x2bc   : > { %v2010_v24 = vpop.f32.mrf.mxu0 }
 0x2bd   : > { %v4211_v37 = vadd.f32 %v2010_v24, %v4149_v0  ;;  %2072 = vmax.xlane.f32.xlu0 %v2071_v18 }
 0x2bf   : > { %v2074_v36 = vmax.f32 %v4208_v5, %v4211_v37 }
 0x2c1   : > { %2075 = vmax.xlane.f32.xlu1 %v2074_v36 }
 0x2c4   : > { %v2014_v41 = vpop.f32.mrf.mxu0 }
 0x2c5   : > { %v4216_v32 = vadd.f32 %v2014_v41, %v4147_v23 }
 0x2c6   : > { %v2016_v20 = vpop.f32.mrf.mxu0 }
 0x2c7   : > { %v4219_v9 = vadd.f32 %v2016_v20, %v4149_v0 }
 0x2c8   : > { %v2018_v22 = vpop.f32.mrf.mxu0 }
 0x2c9   : > { %v2077_v8 = vmax.f32 %v4216_v32, %v4219_v9  ;;  %v4224_v34 = vadd.f32 %v2018_v22, %v4147_v23 }
 0x2ca   : > { %v2020_v28 = vpop.f32.mrf.mxu0 }
 0x2cb   : > { %v4227_v3 = vadd.f32 %v2020_v28, %v4149_v0  ;;  %2078 = vmax.xlane.f32.xlu0 %v2077_v8 }
 0x2cd   : > { %v2080_v35 = vmax.f32 %v4224_v34, %v4227_v3 }
 0x2cf   : > { %v2024_v40 = vpop.f32.mrf.mxu0  ;;  %2081 = vmax.xlane.f32.xlu1 %v2080_v35 }
 0x2d0   : > { %v4232_v44 = vadd.f32 %v2024_v40, %v4147_v23 }
 0x2d1   : > { %v2026_v53 = vpop.f32.mrf.mxu0 }
 0x2d2   : > { %v4235_v46 = vadd.f32 %v2026_v53, %v4149_v0 }
 0x2d3   : > { %v2028_v48 = vpop.f32.mrf.mxu0 }
 0x2d4   : > { %v2083_v39 = vmax.f32 %v4232_v44, %v4235_v46  ;;  %v4240_v55 = vadd.f32 %v2028_v48, %v4147_v23 }
 0x2d5   : > { %v2030_v59 = vpop.f32.mrf.mxu0 }
 0x2d6   : > { %v4243_v10 = vadd.f32 %v2030_v59, %v4149_v0  ;;  %2084 = vmax.xlane.f32.xlu0 %v2083_v39 }
 0x2d8   : > { %v2086_v47 = vmax.f32 %v4240_v55, %v4243_v10 }
 0x2da   : > { %2087 = vmax.xlane.f32.xlu1 %v2086_v47 }
 0x2dd   : > { %v2034_v62 = vpop.f32.mrf.mxu0 }
 0x2de   : > { %v4248_v56 = vadd.f32 %v2034_v62, %v4147_v23 }
 0x2df   : > { %v2036_v4 = vpop.f32.mrf.mxu0 }
 0x2e0   : > { %v4251_v21 = vadd.f32 %v2036_v4, %v4149_v0 }
 0x2e1   : > { %v2038_v51 = vpop.f32.mrf.mxu0 }
 0x2e2   : > { %v2089_v38 = vmax.f32 %v4248_v56, %v4251_v21  ;;  %v4256_v52 = vadd.f32 %v2038_v51, %v4147_v23 }
 0x2e3   : > { %v2040_v31 = vpop.f32.mrf.mxu0 }
 0x2e4   : > { %v4259_v30 = vadd.f32 %v2040_v31, %v4149_v0  ;;  %2090 = vmax.xlane.f32.xlu0 %v2089_v38 }
 0x2e6   : > { %v2092_v50 = vmax.f32 %v4256_v52, %v4259_v30 }
 0x2e7   : > { %v2044_v15 = vpop.f32.mrf.mxu0 }
 0x2e8   : > { %2093 = vmax.xlane.f32.xlu1 %v2092_v50  ;;  %v4264_v43 = vadd.f32 %v2044_v15, %v4147_v23 }
 0x2e9   : > { %v2046_v19 = vpop.f32.mrf.mxu0 }
 0x2ea   : > { %v4267_v63 = vadd.f32 %v2046_v19, %v4149_v0 }
 0x2eb   : > { %v2048_v26 = vpop.f32.mrf.mxu0 }
 0x2ec   : > { %v2095_v29 = vmax.f32 %v4264_v43, %v4267_v63  ;;  %v4272_v12 = vadd.f32 %v2048_v26, %v4147_v23 }
 0x2ed   : > { %v2050_v54 = vpop.f32.mrf.mxu0 }
 0x2ee   : > { %v4275_v14 = vadd.f32 %v2050_v54, %v4149_v0  ;;  %2096 = vmax.xlane.f32.xlu0 %v2095_v29 }
 0x2f0   : > { %v2098_v13 = vmax.f32 %v4272_v12, %v4275_v14 }
 0x2f2   : > { %2099 = vmax.xlane.f32.xlu1 %v2098_v13 }
 0x32e   : > { %v2055_v6 = vpop.xlane.xlu1 %2054 }
 0x32f   : > { %v4280_v16 = vsub.f32 %v4152_v25, %v2055_v6  ;;  %v4283_v45 = vsub.f32 %v4155_v58, %v2055_v6 }
 0x331   : > { %v2133_v18 = vmul.f32 1.442695, %v4280_v16  ;;  %v2135_v23 = vmul.f32 1.442695, %v4283_v45 }
 0x332   : > { %v2058_v24 = vpop.xlane.xlu0 %2057 }
 0x333   : > { %3239 = vpow2.f32 %v2133_v18  ;;  %v4288_v0 = vsub.f32 %v4160_v33, %v2058_v24  ;;  %v4291_v36 = vsub.f32 %v4163_v42, %v2058_v24 }
 0x334   : > { %3241 = vpow2.f32 %v2135_v23 }
 0x335   : > { %v2137_v41 = vmul.f32 1.442695, %v4288_v0  ;;  %v2139_v25 = vmul.f32 1.442695, %v4291_v36 }
 0x336   : > { %v2061_v20 = vpop.xlane.xlu0 %2060 }
 0x337   : > { %3243 = vpow2.f32 %v2137_v41  ;;  %v4296_v58 = vsub.f32 %v4168_v17, %v2061_v20  ;;  %v4299_v22 = vsub.f32 %v4171_v60, %v2061_v20 }
 0x338   : > { %3245 = vpow2.f32 %v2139_v25 }
 0x339   : > { %v2141_v33 = vmul.f32 1.442695, %v4296_v58  ;;  %v2143_v8 = vmul.f32 1.442695, %v4299_v22 }
 0x33a   : > { %v2064_v42 = vpop.xlane.xlu1 %2063 }
 0x33b   : > { %3247 = vpow2.f32 %v2141_v33  ;;  %v4304_v28 = vsub.f32 %v4176_v49, %v2064_v42  ;;  %v4307_v35 = vsub.f32 %v4179_v57, %v2064_v42 }
 0x33c   : > { %3249 = vpow2.f32 %v2143_v8 }
 0x33d   : > { %v2145_v17 = vmul.f32 1.442695, %v4304_v28  ;;  %v2147_v40 = vmul.f32 1.442695, %v4307_v35 }
 0x33e   : > { %v2067_v60 = vpop.xlane.xlu0 %2066 }
 0x33f   : > { %3251 = vpow2.f32 %v2145_v17  ;;  %v4312_v53 = vsub.f32 %v4184_v1, %v2067_v60  ;;  %v4315_v48 = vsub.f32 %v4187_v11, %v2067_v60 }
 0x340   : > { %v3240_v39 = vpop.eup %3239  ;;  %3253 = vpow2.f32 %v2147_v40 }
 0x341   : > { %v3242_v49 = vpop.eup %3241  ;;  %v2149_v59 = vmul.f32 1.442695, %v4312_v53  ;;  %v2151_v57 = vmul.f32 1.442695, %v4315_v48 }
 0x342   : > { %v2070_v47 = vpop.xlane.xlu1 %2069  ;;  %v2197_v62 = vadd.f32 %v3242_v49, %v3240_v39 }
 0x343   : > { %3255 = vpow2.f32 %v2149_v59  ;;  %v4320_v4 = vsub.f32 %v4192_v7, %v2070_v47  ;;  %v4323_v51 = vsub.f32 %v4195_v27, %v2070_v47 }
 0x344   : > { %v3244_v1 = vpop.eup %3243  ;;  %3257 = vpow2.f32 %v2151_v57  ;;  %2198 = vadd.xlane.f32.xlu0 %v2197_v62 }
 0x345   : > { %v3246_v11 = vpop.eup %3245  ;;  %v2153_v38 = vmul.f32 1.442695, %v4320_v4  ;;  %v2155_v31 = vmul.f32 1.442695, %v4323_v51 }
 0x346   : > { %v2200_v50 = vadd.f32 %v3246_v11, %v3244_v1  ;;  %v2073_v15 = vpop.xlane.xlu0 %2072 }
 0x347   : > { %3259 = vpow2.f32 %v2153_v38  ;;  %v4328_v19 = vsub.f32 %v4200_v61, %v2073_v15  ;;  %v4331_v7 = vsub.f32 %v4203_v2, %v2073_v15 }
 0x348   : > { %v3248_v26 = vpop.eup %3247  ;;  %3261 = vpow2.f32 %v2155_v31  ;;  %2201 = vadd.xlane.f32.xlu1 %v2200_v50 }
 0x349   : > { %v3250_v27 = vpop.eup %3249  ;;  %v2157_v29 = vmul.f32 1.442695, %v4328_v19  ;;  %v2159_v54 = vmul.f32 1.442695, %v4331_v7 }
 0x34a   : > { %v2076_v13 = vpop.xlane.xlu1 %2075  ;;  %v2203_v6 = vadd.f32 %v3250_v27, %v3248_v26 }
 0x34b   : > { %3263 = vpow2.f32 %v2157_v29  ;;  %v4336_v18 = vsub.f32 %v4208_v5, %v2076_v13  ;;  %v4339_v61 = vsub.f32 %v4211_v37, %v2076_v13 }
 0x34c   : > { %v3252_v23 = vpop.eup %3251  ;;  %3265 = vpow2.f32 %v2159_v54  ;;  %2204 = vadd.xlane.f32.xlu0 %v2203_v6 }
 0x34d   : > { %v3254_v2 = vpop.eup %3253  ;;  %v2161_v24 = vmul.f32 1.442695, %v4336_v18  ;;  %v2163_v41 = vmul.f32 1.442695, %v4339_v61 }
 0x34e   : > { %v2206_v25 = vadd.f32 %v3254_v2, %v3252_v23 }
 0x34f   : > { %3267 = vpow2.f32 %v2161_v24 }
 0x350   : > { %v3256_v20 = vpop.eup %3255  ;;  %3269 = vpow2.f32 %v2163_v41  ;;  %2207 = vadd.xlane.f32.xlu1 %v2206_v25 }
 0x351   : > { %v3258_v33 = vpop.eup %3257 }
 0x352   : > { %v2209_v8 = vadd.f32 %v3258_v33, %v3256_v20 }
 0x354   : > { %v3260_v5 = vpop.eup %3259  ;;  %2210 = vadd.xlane.f32.xlu0 %v2209_v8  ;;  %v2079_v42 = vpop.xlane.xlu0 %2078 }
 0x355   : > { %v3262_v37 = vpop.eup %3261  ;;  %v4344_v17 = vsub.f32 %v4216_v32, %v2079_v42  ;;  %v4347_v40 = vsub.f32 %v4219_v9, %v2079_v42 }
 0x356   : > { %v2212_v60 = vadd.f32 %v3262_v37, %v3260_v5 }
 0x357   : > { %v2165_v39 = vmul.f32 1.442695, %v4344_v17  ;;  %v2167_v49 = vmul.f32 1.442695, %v4347_v40 }
 0x358   : > { %v3264_v59 = vpop.eup %3263  ;;  %2213 = vadd.xlane.f32.xlu1 %v2212_v60  ;;  %v2082_v57 = vpop.xlane.xlu1 %2081 }
 0x359   : > { %v3266_v47 = vpop.eup %3265  ;;  %3271 = vpow2.f32 %v2165_v39  ;;  %v4352_v62 = vsub.f32 %v4224_v34, %v2082_v57  ;;  %v4355_v1 = vsub.f32 %v4227_v3, %v2082_v57 }
 0x35a   : > { %3273 = vpow2.f32 %v2167_v49  ;;  %v2215_v32 = vadd.f32 %v3266_v47, %v3264_v59 }
 0x35b   : > { %v2169_v9 = vmul.f32 1.442695, %v4352_v62  ;;  %v2171_v11 = vmul.f32 1.442695, %v4355_v1 }
 0x35c   : > { %v3268_v38 = vpop.eup %3267  ;;  %2216 = vadd.xlane.f32.xlu0 %v2215_v32 }
 0x35d   : > { %v3270_v31 = vpop.eup %3269  ;;  %3275 = vpow2.f32 %v2169_v9 }
 0x35e   : > { %3277 = vpow2.f32 %v2171_v11  ;;  %v2218_v50 = vadd.f32 %v3270_v31, %v3268_v38 }
 0x35f   : > { %v2085_v15 = vpop.xlane.xlu0 %2084 }
 0x360   : > { %v4360_v26 = vsub.f32 %v4232_v44, %v2085_v15  ;;  %v4363_v34 = vsub.f32 %v4235_v46, %v2085_v15  ;;  %2219 = vadd.xlane.f32.xlu1 %v2218_v50 }
 0x362   : > { %v2173_v3 = vmul.f32 1.442695, %v4360_v26  ;;  %v2175_v27 = vmul.f32 1.442695, %v4363_v34 }
 0x363   : > { %v2088_v29 = vpop.xlane.xlu1 %2087 }
 0x364   : > { %3279 = vpow2.f32 %v2173_v3  ;;  %v4368_v54 = vsub.f32 %v4240_v55, %v2088_v29  ;;  %v4371_v13 = vsub.f32 %v4243_v10, %v2088_v29 }
 0x365   : > { %3281 = vpow2.f32 %v2175_v27 }
 0x366   : > { %v3272_v6 = vpop.eup %3271  ;;  %v2177_v44 = vmul.f32 1.442695, %v4368_v54  ;;  %v2179_v46 = vmul.f32 1.442695, %v4371_v13 }
 0x367   : > { %v3274_v23 = vpop.eup %3273 }
 0x368   : > { %3283 = vpow2.f32 %v2177_v44  ;;  %v2221_v2 = vadd.f32 %v3274_v23, %v3272_v6 }
 0x369   : > { %3285 = vpow2.f32 %v2179_v46 }
 0x36a   : > { %v3276_v24 = vpop.eup %3275  ;;  %2222 = vadd.xlane.f32.xlu0 %v2221_v2 }
 0x36b   : > { %v3278_v41 = vpop.eup %3277 }
 0x36c   : > { %v2224_v25 = vadd.f32 %v3278_v41, %v3276_v24 }
 0x36d   : > { %v2091_v20 = vpop.xlane.xlu0 %2090 }
 0x36e   : > { %v4376_v55 = vsub.f32 %v4248_v56, %v2091_v20  ;;  %v4379_v10 = vsub.f32 %v4251_v21, %v2091_v20  ;;  %2225 = vadd.xlane.f32.xlu1 %v2224_v25 }
 0x370   : > { %v2181_v33 = vmul.f32 1.442695, %v4376_v55  ;;  %v2183_v8 = vmul.f32 1.442695, %v4379_v10 }
 0x371   : > { %v3280_v5 = vpop.eup %3279  ;;  %v2094_v42 = vpop.xlane.xlu1 %2093 }
 0x372   : > { %v3282_v37 = vpop.eup %3281  ;;  %3287 = vpow2.f32 %v2181_v33  ;;  %v4384_v60 = vsub.f32 %v4256_v52, %v2094_v42  ;;  %v4387_v39 = vsub.f32 %v4259_v30, %v2094_v42 }
 0x373   : > { %3289 = vpow2.f32 %v2183_v8  ;;  %v2227_v56 = vadd.f32 %v3282_v37, %v3280_v5 }
 0x374   : > { %v2185_v21 = vmul.f32 1.442695, %v4384_v60  ;;  %v2187_v49 = vmul.f32 1.442695, %v4387_v39 }
 0x375   : > { %v3284_v59 = vpop.eup %3283  ;;  %2228 = vadd.xlane.f32.xlu0 %v2227_v56 }
 0x376   : > { %v3286_v57 = vpop.eup %3285  ;;  %3291 = vpow2.f32 %v2185_v21 }
 0x377   : > { %3293 = vpow2.f32 %v2187_v49  ;;  %v2097_v47 = vpop.xlane.xlu0 %2096  ;;  %v2230_v32 = vadd.f32 %v3286_v57, %v3284_v59 }
 0x378   : > { %v4392_v9 = vsub.f32 %v4264_v43, %v2097_v47  ;;  %v4395_v52 = vsub.f32 %v4267_v63, %v2097_v47 }
 0x379   : > { %2231 = vadd.xlane.f32.xlu1 %v2230_v32 }
 0x37a   : > { %v2189_v30 = vmul.f32 1.442695, %v4392_v9  ;;  %v2191_v11 = vmul.f32 1.442695, %v4395_v52 }
 0x37b   : > { %v2100_v38 = vpop.xlane.xlu1 %2099 }
 0x37c   : > { %3295 = vpow2.f32 %v2189_v30  ;;  %v4400_v31 = vsub.f32 %v4272_v12, %v2100_v38  ;;  %v4403_v50 = vsub.f32 %v4275_v14, %v2100_v38 }
 0x37d   : > { %3297 = vpow2.f32 %v2191_v11 }
 0x37e   : > { %v2193_v43 = vmul.f32 1.442695, %v4400_v31  ;;  %v2195_v15 = vmul.f32 1.442695, %v4403_v50 }
 0x37f   : > { %v3288_v63 = vpop.eup %3287 }
 0x380   : > { %v3290_v3 = vpop.eup %3289  ;;  %3299 = vpow2.f32 %v2193_v43 }
 0x381   : > { %3301 = vpow2.f32 %v2195_v15  ;;  %v2233_v27 = vadd.f32 %v3290_v3, %v3288_v63 }
 0x383   : > { %v3292_v29 = vpop.eup %3291  ;;  %2234 = vadd.xlane.f32.xlu0 %v2233_v27 }
 0x384   : > { %v3294_v6 = vpop.eup %3293 }
 0x385   : > { %v2236_v44 = vadd.f32 %v3294_v6, %v3292_v29 }
 0x387   : > { %2237 = vadd.xlane.f32.xlu1 %v2236_v44 }
 0x389   : > { %v3296_v12 = vpop.eup %3295 }
 0x38a   : > { %v3298_v14 = vpop.eup %3297 }
 0x38b   : > { %v2239_v46 = vadd.f32 %v3298_v14, %v3296_v12 }
 0x38d   : > { %v3300_v23 = vpop.eup %3299  ;;  %2240 = vadd.xlane.f32.xlu0 %v2239_v46 }
 0x38e   : > { %v3302_v2 = vpop.eup %3301 }
 0x38f   : > { %v2242_v24 = vadd.f32 %v3302_v2, %v3300_v23 }
 0x391   : > { %2243 = vadd.xlane.f32.xlu1 %v2242_v24 }
 0x3cd   : > { %v2199_v41 = vpop.xlane.xlu0 %2198 }
 0x3ce   : > { %3303 = vlog2.f32 %v2199_v41 }
 0x3d1   : > { %v2202_v25 = vpop.xlane.xlu1 %2201 }
 0x3d2   : > { %3305 = vlog2.f32 %v2202_v25 }
 0x3d5   : > { %v2205_v20 = vpop.xlane.xlu0 %2204 }
 0x3d6   : > { %3307 = vlog2.f32 %v2205_v20 }
 0x3d9   : > { %v2208_v33 = vpop.xlane.xlu1 %2207 }
 0x3da   : > { %3309 = vlog2.f32 %v2208_v33 }
 0x3db   : > { %v3304_v8 = vpop.eup %3303 }
 0x3dc   : > { %v2246_v5 = vmul.f32 0.6931472, %v3304_v8 }
 0x3dd   : > { %v2211_v42 = vpop.xlane.xlu0 %2210 }
 0x3de   : > { %v2277_v37 = vsub.f32 %v4280_v16, %v2246_v5  ;;  %v2278_v56 = vsub.f32 %v4283_v45, %v2246_v5  ;;  %3311 = vlog2.f32 %v2211_v42 }
 0x3df   : > { %v3306_v21 = vpop.eup %3305 }
 0x3e0   : > { %2309 = vst [vmem:[%s4412_s8] sm:$0xff] %v2277_v37  ;;  %2310 = vst [vmem:[%s4412_s8 + $0x8] sm:$0xff] %v2278_v56  ;;  %v2248_v49 = vmul.f32 0.6931472, %v3306_v21 }
 0x3e1   : > { %v2214_v59 = vpop.xlane.xlu1 %2213 }
 0x3e2   : > { %v2279_v57 = vsub.f32 %v4288_v0, %v2248_v49  ;;  %v2280_v16 = vsub.f32 %v4291_v36, %v2248_v49  ;;  %3313 = vlog2.f32 %v2214_v59 }
 0x3e3   : > { %v3308_v45 = vpop.eup %3307 }
 0x3e4   : > { %2311 = vst [vmem:[%s4412_s8 + $0x10] sm:$0xff] %v2279_v57  ;;  %2312 = vst [vmem:[%s4412_s8 + $0x18] sm:$0xff] %v2280_v16  ;;  %v2250_v47 = vmul.f32 0.6931472, %v3308_v45 }
 0x3e5   : > { %v2217_v32 = vpop.xlane.xlu0 %2216 }
 0x3e6   : > { %v2281_v30 = vsub.f32 %v4296_v58, %v2250_v47  ;;  %v2282_v11 = vsub.f32 %v4299_v22, %v2250_v47  ;;  %3315 = vlog2.f32 %v2217_v32 }
 0x3e7   : > { %v3310_v38 = vpop.eup %3309 }
 0x3e8   : > { %2313 = vst [vmem:[%s4412_s8 + $0x20] sm:$0xff] %v2281_v30  ;;  %2314 = vst [vmem:[%s4412_s8 + $0x28] sm:$0xff] %v2282_v11  ;;  %v2252_v0 = vmul.f32 0.6931472, %v3310_v38 }
 0x3e9   : > { %v2220_v36 = vpop.xlane.xlu1 %2219 }
 0x3ea   : > { %v2283_v43 = vsub.f32 %v4304_v28, %v2252_v0  ;;  %v2284_v15 = vsub.f32 %v4307_v35, %v2252_v0  ;;  %3317 = vlog2.f32 %v2220_v36 }
 0x3eb   : > { %v3312_v63 = vpop.eup %3311 }
 0x3ec   : > { %2315 = vst [vmem:[%s4412_s8 + $0x30] sm:$0xff] %v2283_v43  ;;  %2316 = vst [vmem:[%s4412_s8 + $0x38] sm:$0xff] %v2284_v15  ;;  %v2254_v58 = vmul.f32 0.6931472, %v3312_v63 }
 0x3ee   : > { %v2285_v22 = vsub.f32 %v4312_v53, %v2254_v58  ;;  %v2286_v3 = vsub.f32 %v4315_v48, %v2254_v58 }
 0x3ef   : > { %v3314_v27 = vpop.eup %3313 }
 0x3f0   : > { %2317 = vst [vmem:[%s4412_s8 + $0x40] sm:$0xff] %v2285_v22  ;;  %2318 = vst [vmem:[%s4412_s8 + $0x48] sm:$0xff] %v2286_v3  ;;  %v2256_v29 = vmul.f32 0.6931472, %v3314_v27 }
 0x3f2   : > { %v2287_v28 = vsub.f32 %v4320_v4, %v2256_v29  ;;  %v2288_v35 = vsub.f32 %v4323_v51, %v2256_v29 }
 0x3f3   : > { %v3316_v6 = vpop.eup %3315  ;;  %v2223_v44 = vpop.xlane.xlu0 %2222 }
 0x3f4   : > { %2319 = vst [vmem:[%s4412_s8 + $0x50] sm:$0xff] %v2287_v28  ;;  %2320 = vst [vmem:[%s4412_s8 + $0x58] sm:$0xff] %v2288_v35  ;;  %v2258_v12 = vmul.f32 0.6931472, %v3316_v6  ;;  %3319 = vlog2.f32 %v2223_v44 }
 0x3f6   : > { %v2289_v53 = vsub.f32 %v4328_v19, %v2258_v12  ;;  %v2290_v48 = vsub.f32 %v4331_v7, %v2258_v12 }
 0x3f7   : > { %v3318_v14 = vpop.eup %3317  ;;  %v2226_v46 = vpop.xlane.xlu1 %2225 }
 0x3f8   : > { %2321 = vst [vmem:[%s4412_s8 + $0x60] sm:$0xff] %v2289_v53  ;;  %2322 = vst [vmem:[%s4412_s8 + $0x68] sm:$0xff] %v2290_v48  ;;  %v2260_v4 = vmul.f32 0.6931472, %v3318_v14  ;;  %3321 = vlog2.f32 %v2226_v46 }
 0x3fa   : > { %v2291_v51 = vsub.f32 %v4336_v18, %v2260_v4  ;;  %v2292_v23 = vsub.f32 %v4339_v61, %v2260_v4 }
 0x3fc   : > { %2323 = vst [vmem:[%s4412_s8 + $0x70] sm:$0xff] %v2291_v51  ;;  %2324 = vst [vmem:[%s4412_s8 + $0x78] sm:$0xff] %v2292_v23 }
 0x3fe   : > { %v2229_v2 = vpop.xlane.xlu0 %2228 }
 0x3ff   : > { %3323 = vlog2.f32 %v2229_v2 }
 0x401   : > { %v3320_v19 = vpop.eup %3319 }
 0x402   : > { %v2262_v7 = vmul.f32 0.6931472, %v3320_v19  ;;  %v2232_v24 = vpop.xlane.xlu1 %2231 }
 0x403   : > { %3325 = vlog2.f32 %v2232_v24 }
 0x404   : > { %v2293_v41 = vsub.f32 %v4344_v17, %v2262_v7  ;;  %v2294_v25 = vsub.f32 %v4347_v40, %v2262_v7 }
 0x405   : > { %v3322_v20 = vpop.eup %3321 }
 0x406   : > { %2325 = vst [vmem:[%s4412_s8 + $0x80] sm:$0xff] %v2293_v41  ;;  %2326 = vst [vmem:[%s4412_s8 + $0x88] sm:$0xff] %v2294_v25  ;;  %v2264_v18 = vmul.f32 0.6931472, %v3322_v20 }
 0x408   : > { %v2295_v61 = vsub.f32 %v4352_v62, %v2264_v18  ;;  %v2296_v33 = vsub.f32 %v4355_v1, %v2264_v18 }
 0x40a   : > { %2327 = vst [vmem:[%s4412_s8 + $0x90] sm:$0xff] %v2295_v61  ;;  %2328 = vst [vmem:[%s4412_s8 + $0x98] sm:$0xff] %v2296_v33 }
 0x40c   : > { %v3324_v8 = vpop.eup %3323  ;;  %v2235_v5 = vpop.xlane.xlu0 %2234 }
 0x40d   : > { %v2266_v42 = vmul.f32 0.6931472, %v3324_v8  ;;  %3327 = vlog2.f32 %v2235_v5 }
 0x40f   : > { %v2297_v17 = vsub.f32 %v4360_v26, %v2266_v42  ;;  %v2298_v40 = vsub.f32 %v4363_v34, %v2266_v42 }
 0x410   : > { %v3326_v37 = vpop.eup %3325  ;;  %v2238_v56 = vpop.xlane.xlu1 %2237 }
 0x411   : > { %2329 = vst [vmem:[%s4412_s8 + $0xa0] sm:$0xff] %v2297_v17  ;;  %2330 = vst [vmem:[%s4412_s8 + $0xa8] sm:$0xff] %v2298_v40  ;;  %v2268_v62 = vmul.f32 0.6931472, %v3326_v37  ;;  %3329 = vlog2.f32 %v2238_v56 }
 0x413   : > { %v2299_v1 = vsub.f32 %v4368_v54, %v2268_v62  ;;  %v2300_v21 = vsub.f32 %v4371_v13, %v2268_v62 }
 0x415   : > { %2331 = vst [vmem:[%s4412_s8 + $0xb0] sm:$0xff] %v2299_v1  ;;  %2332 = vst [vmem:[%s4412_s8 + $0xb8] sm:$0xff] %v2300_v21 }
 0x416   : > { %v2241_v49 = vpop.xlane.xlu0 %2240 }
 0x417   : > { %3331 = vlog2.f32 %v2241_v49 }
 0x41a   : > { %v3328_v26 = vpop.eup %3327  ;;  %v2244_v34 = vpop.xlane.xlu1 %2243 }
 0x41b   : > { %v2270_v59 = vmul.f32 0.6931472, %v3328_v26  ;;  %3333 = vlog2.f32 %v2244_v34 }
 0x41d   : > { %v2301_v57 = vsub.f32 %v4376_v55, %v2270_v59  ;;  %v2302_v16 = vsub.f32 %v4379_v10, %v2270_v59 }
 0x41e   : > { %v3330_v54 = vpop.eup %3329 }
 0x41f   : > { %2333 = vst [vmem:[%s4412_s8 + $0xc0] sm:$0xff] %v2301_v57  ;;  %2334 = vst [vmem:[%s4412_s8 + $0xc8] sm:$0xff] %v2302_v16  ;;  %v2272_v13 = vmul.f32 0.6931472, %v3330_v54 }
 0x421   : > { %v2303_v45 = vsub.f32 %v4384_v60, %v2272_v13  ;;  %v2304_v47 = vsub.f32 %v4387_v39, %v2272_v13 }
 0x423   : > { %2335 = vst [vmem:[%s4412_s8 + $0xd0] sm:$0xff] %v2303_v45  ;;  %2336 = vst [vmem:[%s4412_s8 + $0xd8] sm:$0xff] %v2304_v47 }
 0x424   : > { %v3332_v32 = vpop.eup %3331 }
 0x425   : > { %v2274_v30 = vmul.f32 0.6931472, %v3332_v32 }
 0x427   : > { %v2305_v55 = vsub.f32 %v4392_v9, %v2274_v30  ;;  %v2306_v10 = vsub.f32 %v4395_v52, %v2274_v30 }
 0x428   : > { %v3334_v11 = vpop.eup %3333 }
 0x429   : > { %2337 = vst [vmem:[%s4412_s8 + $0xe0] sm:$0xff] %v2305_v55  ;;  %2338 = vst [vmem:[%s4412_s8 + $0xe8] sm:$0xff] %v2306_v10  ;;  %v2276_v60 = vmul.f32 0.6931472, %v3334_v11 }
 0x42b   : > { %v2307_v39 = vsub.f32 %v4400_v31, %v2276_v60  ;;  %v2308_v9 = vsub.f32 %v4403_v50, %v2276_v60 }
 0x42d   : > { %2339 = vst [vmem:[%s4412_s8 + $0xf0] sm:$0xff] %v2307_v39  ;;  %2340 = vst [vmem:[%s4412_s8 + $0xf8] sm:$0xff] %v2308_v9 }
 0x42e   : > { %3374 = shalt.err (!%p3371_p0)
}
 0x42f   : > { %s3375_s23 = scalar_lea.hbm %s4477_s13, 4096  ;;  %s3379_s30 = scalar_lea.hbm %s4532_s5, 8192 }
 0x430   : > { %p3376_p1 = scmp.ne.s32.totalorder %s4477_s13, %s3375_s23  ;;  %p3380_p4 = scmp.lt.s32.totalorder %s4477_s13, %s4532_s5 }
 0x431   : > { %p3381_p7 = scmp.lt.s32.totalorder %s3379_s30, %s3375_s23 }
 0x432   : > { %p3377_p2 = pnand %p3376_p1, %p3506_p5 }
 0x433   : > { %p3382_p6 = por %p3381_p7, %p3380_p4 }
 0x434   : > { %p3378_p3 = pneg %p3377_p2 }
 0x436   : > { %p3383_p8 = pnand %p3382_p6, %p3378_p3 }
 0x438   : > { %3386 = shalt.err (!%p3383_p8)
}
 0x439   : > { %s3436_s8 = smov 256   ;;  %s3437_s9 = smov 16  }
 0x43a   : > { %3060 = dma.vmem_to_hbm [thread:$0]  (%p3506_p5), %s4479_s10, 4096, %s4477_s13, %s4487_s22, %s3436_s8, %s3436_s8, %s3437_s9  }
 0x43b PF: > { %p3072_p9 = scmp.ge.s32.totalorder %s3425_s21, 2  ;;  %s2371_s11 = sand.u32 1, %s3413_s18  }
 0x43c   : > { %p4538_p10 = scmp.ne.s32.totalorder %s4534_s29, 0  ;;  %s2372_s12 = scalar_lea.sflag [#allocation4], %s2371_s11 }
 0x43e   : > { %p3067_p11 = pnand %p3072_p9, %p4538_p10 }
 0x440   : > { %p3068_p12 = pneg %p3067_p11 }
 0x442   : > { %3408 = dma.done.wait (%p3068_p12), %s2372_s12, 4096  }
 0x443   : > { %3410 = vsyncadd (%p3068_p12), %s2372_s12, 4294963200  ;;  %p16_p13 = scmp.ge.s32.totalorder %s3493_s24, 4   ;;  %s4539_s18 = smov %s3417_s19 }
 0x444   : > { %s4540_s19 = smov %s3421_s20  ;;  %s4541_s20 = smov %s3504_s27 }
 0x445   : > { %s4542_s21 = smov %s3493_s24  ;;  %18 = sbr.rel (!%p16_p13) target bundleno = 4 (0x4), region = 80 }
 0x44a   :  { %2377 = vsyncpa [#allocation3], 1 }
 0x44b   :  { %2379 = vsyncpa [#allocation3 + $0x1], 1 }
 0x44c   :  { %2380 = vsyncpa [#allocation4], 1 }
 0x44d   :  { %2382 = vsyncpa [#allocation4 + $0x1], 1 }

</bundles_post_ra>
